<compile_context>
chip_gen: v5e
topology: v5e:2x2
jax: 0.10.0
libtpu: 0.0.40
codegen_flags: <defaults>
</compile_context>

<pallas_src>
import functools

import jax
import jax.numpy as jnp
from jax.experimental import pallas as pl
from jax.experimental.pallas import tpu as pltpu

# Keep reference and kernel matmul precision comparable for the correctness check.
jax.config.update("jax_default_matmul_precision", "highest")


# ----------------------------- Pallas kernels --------------------------------

def _gru_gates(gi_t, gh_t, h, H):
    """Fused-gate GRU cell math (PyTorch gate order r|z|n along the last axis).

    gi_t, gh_t: (B, 3H) f32 precomputed input/hidden projections (+bias); h: (B, H) f32.
    """
    r = jax.nn.sigmoid(gi_t[:, :H] + gh_t[:, :H])
    z = jax.nn.sigmoid(gi_t[:, H:2 * H] + gh_t[:, H:2 * H])
    n = jnp.tanh(gi_t[:, 2 * H:] + r * gh_t[:, 2 * H:])
    return (1.0 - z) * n + z * h


def _decoder_kernel(x_ref, h0_ref, wih_ref, whh_ref, bih_ref, bhh_ref,
                    wout_ref, bout_ref,
                    logits_ref, hout_ref,
                    h_vmem, gi_vmem, hall_vmem, *, T, B, H):
    """use_attention=False path: embed(x) -> GRU -> Linear(H, V)."""
    # Hoisted input projection for ALL timesteps: one well-shaped (T*B, E) @ (E, 3H) matmul.
    gi = (jnp.dot(x_ref[...], wih_ref[...], preferred_element_type=jnp.float32)
          + bih_ref[...])
    gi_vmem[...] = gi.reshape(T, B, 3 * H)

    h_vmem[...] = h0_ref[...].astype(jnp.float32)
    whh = whh_ref[...]
    bhh = bhh_ref[...]

    @pl.loop(0, T, unroll=True)
    def _(t):
        h = h_vmem[...]                                            # (B, H)
        gi_t = gi_vmem[t]                                          # (B, 3H) precomputed
        gh_t = jnp.dot(h, whh, preferred_element_type=jnp.float32) + bhh
        h_new = _gru_gates(gi_t, gh_t, h, H)
        h_vmem[...] = h_new
        hall_vmem[t] = h_new

    # Hoisted output projection: one (T*B, H) @ (H, V) matmul + single writeback.
    h_all = hall_vmem[...].reshape(T * B, H)
    logits_ref[...] = (jnp.dot(h_all, wout_ref[...], preferred_element_type=jnp.float32)
                       + bout_ref[...])
    hout_ref[...] = h_vmem[...]


def _decoder_attn_kernel(x_ref, h0_ref, enc_ref, wih_ref, whh_ref, bih_ref, bhh_ref,
                         watt_ref, batt_ref, wout_h_ref, wout_w_ref, bout_ref,
                         logits_ref, hout_ref,
                         h_vmem, gi_vmem, hall_vmem, wall_vmem, *, T, B, H):
    """use_attention=True path: attention(enc, h_prev) -> context; GRU step; Linear(3H, V)."""
    _, S, K2 = enc_ref.shape
    enc = enc_ref[...].astype(jnp.float32)                         # (B, S, 2H)

    # Hoisted, time-invariant attention key projection: Linear(2H -> H)(enc), computed ONCE.
    key = (jnp.dot(enc.reshape(B * S, K2), watt_ref[...],
                   preferred_element_type=jnp.float32) + batt_ref[...])
    key = key.reshape(B, S, H)                                     # (B, S, H)

    # Hoisted input projection for ALL timesteps.
    gi = (jnp.dot(x_ref[...], wih_ref[...], preferred_element_type=jnp.float32)
          + bih_ref[...])
    gi_vmem[...] = gi.reshape(T, B, 3 * H)

    h_vmem[...] = h0_ref[...].astype(jnp.float32)
    whh = whh_ref[...]
    bhh = bhh_ref[...]

    @pl.loop(0, T, unroll=True)
    def _(t):
        h = h_vmem[...]                                            # hidden BEFORE this step

        # Attention: scores = bmm(key, h); softmax over S; context = atten @ enc.
        scores = jnp.einsum('bqh,bsh->bqs', h[:, None, :], key,
                            preferred_element_type=jnp.float32)    # (B, 1, S)
        scores = scores - jnp.max(scores, axis=-1, keepdims=True)
        e = jnp.exp(scores)
        atten = e / jnp.sum(e, axis=-1, keepdims=True)             # softmax(dim=S)
        ctx = jnp.einsum('bqs,bsk->bqk', atten, enc,
                         preferred_element_type=jnp.float32)[:, 0, :]   # (B, 2H)

        # GRU step (input projection precomputed; only h @ W_hh stays in the loop).
        gi_t = gi_vmem[t]                                          # (B, 3H)
        gh_t = jnp.dot(h, whh, preferred_element_type=jnp.float32) + bhh
        h_new = _gru_gates(gi_t, gh_t, h, H)

        h_vmem[...] = h_new
        hall_vmem[t] = h_new
        wall_vmem[t] = ctx

    # Hoisted output projection: Linear(3H -> V) on cat([o, w]) as a split matmul over all
    # timesteps at once (no concat, single lane-dense writeback).
    h_all = hall_vmem[...].reshape(T * B, H)
    w_all = wall_vmem[...].reshape(T * B, 2 * H)
    logits_ref[...] = (jnp.dot(h_all, wout_h_ref[...], preferred_element_type=jnp.float32)
                       + jnp.dot(w_all, wout_w_ref[...], preferred_element_type=jnp.float32)
                       + bout_ref[...])
    hout_ref[...] = h_vmem[...]


# ------------------------------ wrapper (glue) --------------------------------

def seq2seq_decoder_forward(params, x_tokens, hidden, encoder_outputs=None,
                            use_attention=False):
    """x_tokens: (B, T) int32; hidden: (1, B, H); encoder_outputs: (B, S, 2H) if attention."""
    B, T = x_tokens.shape
    H = hidden.shape[-1]
    E = params["embedding"].shape[-1]
    V = params["b_out"].shape[0]

    # Glue: embedding gather + time-major flatten so all T input projections become ONE
    # (T*B, E) @ (E, 3H) matmul inside the kernel.
    x_emb = jnp.take(params["embedding"], x_tokens, axis=0)          # (B, T, E)
    x_tm = jnp.transpose(x_emb, (1, 0, 2)).reshape(T * B, E)         # (T*B, E), time-major
    h0 = hidden[0]                                                   # (B, H)

    # Fused-gate GRU weights (PyTorch gate order r|z|n stacked along the output axis),
    # transposed for x @ W.
    wih = jnp.transpose(params["w_ih"])                              # (E, 3H)
    whh = jnp.transpose(params["w_hh"])                              # (H, 3H)
    bih = params["b_ih"].reshape(1, 3 * H)
    bhh = params["b_hh"].reshape(1, 3 * H)
    bout = params["b_out"].reshape(1, V)

    def full(shape):
        # Whole-array block (single grid step), so invariant inputs are fetched exactly once.
        return pl.BlockSpec(shape, lambda i: (0,) * len(shape))

    out_specs = [full((T * B, V)), full((B, H))]
    out_shape = (jax.ShapeDtypeStruct((T * B, V), jnp.float32),
                 jax.ShapeDtypeStruct((B, H), jnp.float32))
    cparams = pltpu.CompilerParams(dimension_semantics=("arbitrary",))

    common_in_specs = [
        full((T * B, E)),        # embedded tokens, time-major flattened
        full((B, H)),            # h0
        full((E, 3 * H)),        # W_ih^T (gates fused)
        full((H, 3 * H)),        # W_hh^T (gates fused)
        full((1, 3 * H)),        # b_ih
        full((1, 3 * H)),        # b_hh
    ]
    common_scratch = [
        pltpu.VMEM((B, H), jnp.float32),            # recurrent hidden state
        pltpu.VMEM((T, B, 3 * H), jnp.float32),     # precomputed x @ W_ih for all steps
        pltpu.VMEM((T, B, H), jnp.float32),         # all GRU outputs (hoisted W_out matmul)
    ]

    if not use_attention:
        wout = jnp.transpose(params["w_out"])                        # (H, V)
        in_specs = common_in_specs + [full((H, V)), full((1, V))]
        logits_flat, h_last = pl.pallas_call(
            functools.partial(_decoder_kernel, T=T, B=B, H=H),
            out_shape=out_shape,
            grid_spec=pltpu.PrefetchScalarGridSpec(
                num_scalar_prefetch=0, grid=(1,),
                in_specs=in_specs, out_specs=out_specs,
                scratch_shapes=common_scratch),
            compiler_params=cparams,
        )(x_tm, h0, wih, whh, bih, bhh, wout, bout)
    else:
        S = encoder_outputs.shape[1]
        watt = jnp.transpose(params["w_att"])                        # (2H, H)
        batt = params["b_att"].reshape(1, H)
        wout_full = jnp.transpose(params["w_out"])                   # (3H, V)
        wout_h = wout_full[:H]                                       # (H, V)   GRU-output half
        wout_w = wout_full[H:]                                       # (2H, V)  context half
        in_specs = (common_in_specs[:2]
                    + [full((B, S, 2 * H))]                          # encoder outputs
                    + common_in_specs[2:]
                    + [full((2 * H, H)),                             # attention linear W^T
                       full((1, H)),                                 # attention linear b
                       full((H, V)), full((2 * H, V)), full((1, V))])
        scratch = common_scratch + [pltpu.VMEM((T, B, 2 * H), jnp.float32)]  # contexts
        logits_flat, h_last = pl.pallas_call(
            functools.partial(_decoder_attn_kernel, T=T, B=B, H=H),
            out_shape=out_shape,
            grid_spec=pltpu.PrefetchScalarGridSpec(
                num_scalar_prefetch=0, grid=(1,),
                in_specs=in_specs, out_specs=out_specs,
                scratch_shapes=scratch),
            compiler_params=cparams,
        )(x_tm, h0, encoder_outputs, wih, whh, bih, bhh,
          watt, batt, wout_h, wout_w, bout)

    logits = jnp.transpose(logits_flat.reshape(T, B, V), (1, 0, 2))  # batch_first (B, T, V)
    return logits, h_last[None]                                      # hidden (1, B, H)


# ------------------------- deterministic parameters ---------------------------

def init_params(key, vocab_size, embedding_size, hidden_size, use_attention):
    V, E, H = vocab_size, embedding_size, hidden_size
    ks = jax.random.split(key, 9)
    s = 0.1
    emb = s * jax.random.normal(ks[0], (V, E), jnp.float32)
    emb = emb.at[0].set(0.0)   # padding_idx=0 row of the pretrained table
    p = dict(
        embedding=emb,
        w_ih=s * jax.random.normal(ks[1], (3 * H, E), jnp.float32),
        w_hh=s * jax.random.normal(ks[2], (3 * H, H), jnp.float32),
        b_ih=s * jax.random.normal(ks[3], (3 * H,), jnp.float32),
        b_hh=s * jax.random.normal(ks[4], (3 * H,), jnp.float32),
    )
    if use_attention:
        p.update(
            w_att=s * jax.random.normal(ks[5], (H, 2 * H), jnp.float32),
            b_att=s * jax.random.normal(ks[6], (H,), jnp.float32),
            w_out=s * jax.random.normal(ks[7], (V, 3 * H), jnp.float32),
            b_out=s * jax.random.normal(ks[8], (V,), jnp.float32),
        )
    else:
        p.update(
            w_out=s * jax.random.normal(ks[7], (V, H), jnp.float32),
            b_out=s * jax.random.normal(ks[8], (V,), jnp.float32),
        )
    return p


# ----------------------------- pure-JAX reference -----------------------------

def _gru_cell_ref(p, x_t, h):
    gi = x_t @ p["w_ih"].T + p["b_ih"]
    gh = h @ p["w_hh"].T + p["b_hh"]
    i_r, i_z, i_n = jnp.split(gi, 3, axis=-1)
    h_r, h_z, h_n = jnp.split(gh, 3, axis=-1)
    r = jax.nn.sigmoid(i_r + h_r)
    z = jax.nn.sigmoid(i_z + h_z)
    n = jnp.tanh(i_n + r * h_n)
    return (1.0 - z) * n + z * h


def reference_forward(p, x_tokens, hidden, encoder_outputs=None, use_attention=False):
    emb = jnp.take(p["embedding"], x_tokens, axis=0)   # (B, T, E)
    h = hidden[0]
    T = x_tokens.shape[1]
    outs = []
    if not use_attention:
        for t in range(T):
            h = _gru_cell_ref(p, emb[:, t], h)
            outs.append(h)
        y = jnp.stack(outs, axis=1)
        return y @ p["w_out"].T + p["b_out"], h[None]
    for t in range(T):
        key = encoder_outputs @ p["w_att"].T + p["b_att"]      # (B, S, H)
        scores = jnp.einsum("bsh,bh->bs", key, h)
        atten = jax.nn.softmax(scores, axis=1)
        w = jnp.einsum("bs,bsk->bk", atten, encoder_outputs)   # (B, 2H)
        h = _gru_cell_ref(p, emb[:, t], h)
        o = jnp.concatenate([h, w], axis=1)
        outs.append(o @ p["w_out"].T + p["b_out"])
    return jnp.stack(outs, axis=1), h[None]


# ----------------------------------- main --------------------------------------

if __name__ == "__main__":
    B, T, S = 2, 8, 16          # batch, decoder seq len, encoder seq len
    vocab, E, H = 32, 32, 32    # output_size, embedding_size, hidden_size

    root = jax.random.PRNGKey(0)
    k_tok, k_h, k_enc, k_p1, k_p2 = jax.random.split(root, 5)

    x_tokens = jax.random.randint(k_tok, (B, T), 0, vocab, dtype=jnp.int32)
    hidden0 = 0.1 * jax.random.normal(k_h, (1, B, H), jnp.float32)
    enc = 0.1 * jax.random.normal(k_enc, (B, S, 2 * H), jnp.float32)

    # --- use_attention=False (module default) ---
    p = init_params(k_p1, vocab, E, H, use_attention=False)
    logits, h_last = seq2seq_decoder_forward(p, x_tokens, hidden0, use_attention=False)
    logits, h_last = jax.block_until_ready((logits, h_last))
    ref_logits, ref_h = reference_forward(p, x_tokens, hidden0, use_attention=False)
    assert logits.shape == (B, T, vocab) and h_last.shape == (1, B, H)
    assert jnp.allclose(logits, ref_logits, atol=1e-2, rtol=1e-2)
    assert jnp.allclose(h_last, ref_h, atol=1e-2, rtol=1e-2)

    # --- use_attention=True ---
    pa = init_params(k_p2, vocab, E, H, use_attention=True)
    logits_a, h_last_a = seq2seq_decoder_forward(
        pa, x_tokens, hidden0, encoder_outputs=enc, use_attention=True)
    logits_a, h_last_a = jax.block_until_ready((logits_a, h_last_a))
    ref_logits_a, ref_h_a = reference_forward(
        pa, x_tokens, hidden0, encoder_outputs=enc, use_attention=True)
    assert logits_a.shape == (B, T, vocab) and h_last_a.shape == (1, B, H)
    assert jnp.allclose(logits_a, ref_logits_a, atol=1e-2, rtol=1e-2)
    assert jnp.allclose(h_last_a, ref_h_a, atol=1e-2, rtol=1e-2)

    print("KERNEL_OK")
</pallas_src>

<mosaic_0001>
module attributes {stable_mosaic.version = 11 : i64} {
  func.func @_decoder_kernel(%arg0: i32, %arg1: memref<16x32xf32, #tpu.memory_space<vmem>>, %arg2: memref<2x32xf32, #tpu.memory_space<vmem>>, %arg3: memref<32x96xf32, #tpu.memory_space<vmem>>, %arg4: memref<32x96xf32, #tpu.memory_space<vmem>>, %arg5: memref<1x96xf32, #tpu.memory_space<vmem>>, %arg6: memref<1x96xf32, #tpu.memory_space<vmem>>, %arg7: memref<32x32xf32, #tpu.memory_space<vmem>>, %arg8: memref<1x32xf32, #tpu.memory_space<vmem>>, %arg9: memref<16x32xf32, #tpu.memory_space<vmem>>, %arg10: memref<2x32xf32, #tpu.memory_space<vmem>>, %arg11: memref<2x32xf32, #tpu.memory_space<vmem>>, %arg12: memref<8x2x96xf32, #tpu.memory_space<vmem>>, %arg13: memref<8x2x32xf32, #tpu.memory_space<vmem>>) attributes {dimension_semantics = [#tpu.dimension_semantics<arbitrary>], iteration_bounds = array<i64: 1>, scalar_prefetch = 0 : i64, scratch_operands = 3 : i64, tpu.core_type = #tpu.core_type<tc>, window_params = [{pipeline_mode = #tpu.pipeline_mode<synchronous>, transform_indices = @transform_0, window_bounds = array<i64: 16, 32>}, {pipeline_mode = #tpu.pipeline_mode<synchronous>, transform_indices = @transform_1, window_bounds = array<i64: 2, 32>}, {pipeline_mode = #tpu.pipeline_mode<synchronous>, transform_indices = @transform_2, window_bounds = array<i64: 32, 96>}, {pipeline_mode = #tpu.pipeline_mode<synchronous>, transform_indices = @transform_3, window_bounds = array<i64: 32, 96>}, {pipeline_mode = #tpu.pipeline_mode<synchronous>, transform_indices = @transform_4, window_bounds = array<i64: 1, 96>}, {pipeline_mode = #tpu.pipeline_mode<synchronous>, transform_indices = @transform_5, window_bounds = array<i64: 1, 96>}, {pipeline_mode = #tpu.pipeline_mode<synchronous>, transform_indices = @transform_6, window_bounds = array<i64: 32, 32>}, {pipeline_mode = #tpu.pipeline_mode<synchronous>, transform_indices = @transform_7, window_bounds = array<i64: 1, 32>}, {pipeline_mode = #tpu.pipeline_mode<synchronous>, transform_indices = @transform_8, window_bounds = array<i64: 16, 32>}, {pipeline_mode = #tpu.pipeline_mode<synchronous>, transform_indices = @transform_9, window_bounds = array<i64: 2, 32>}]} {
    %c0 = arith.constant 0 : index
    %c0_0 = arith.constant 0 : index
    %0 = vector.load %arg1[%c0, %c0_0] : memref<16x32xf32, #tpu.memory_space<vmem>>, vector<16x32xf32>
    %c0_1 = arith.constant 0 : index
    %c0_2 = arith.constant 0 : index
    %1 = vector.load %arg3[%c0_1, %c0_2] : memref<32x96xf32, #tpu.memory_space<vmem>>, vector<32x96xf32>
    %cst = arith.constant dense<0.000000e+00> : vector<16x96xf32>
    %2 = tpu.matmul %0, %1, %cst {dimension_numbers = #tpu.dot_dimension_numbers<[1], [0], [0], [1], [0, 0, 1, 1], [], []>, precision = #tpu.contract_precision<fp32>} : vector<16x32xf32>, vector<32x96xf32>, vector<16x96xf32> -> vector<16x96xf32>
    %c0_3 = arith.constant 0 : index
    %c0_4 = arith.constant 0 : index
    %3 = vector.load %arg5[%c0_3, %c0_4] : memref<1x96xf32, #tpu.memory_space<vmem>>, vector<1x96xf32>
    %4 = vector.broadcast %3 : vector<1x96xf32> to vector<16x96xf32>
    %5 = arith.addf %2, %4 : vector<16x96xf32>
    %6 = vector.shape_cast %5 : vector<16x96xf32> to vector<8x2x96xf32>
    %c0_5 = arith.constant 0 : index
    %c0_6 = arith.constant 0 : index
    %c0_7 = arith.constant 0 : index
    %7 = vector.load %arg12[%c0_5, %c0_6, %c0_7] : memref<8x2x96xf32, #tpu.memory_space<vmem>>, vector<8x2x96xf32>
    tpu.vector_store %arg12[%c0_5, %c0_6, %c0_7], %6 {strides = array<i32>} : memref<8x2x96xf32, #tpu.memory_space<vmem>>, vector<8x2x96xf32>,
    %c0_8 = arith.constant 0 : index
    %c0_9 = arith.constant 0 : index
    %8 = vector.load %arg2[%c0_8, %c0_9] : memref<2x32xf32, #tpu.memory_space<vmem>>, vector<2x32xf32>
    %c0_10 = arith.constant 0 : index
    %c0_11 = arith.constant 0 : index
    %9 = vector.load %arg11[%c0_10, %c0_11] : memref<2x32xf32, #tpu.memory_space<vmem>>, vector<2x32xf32>
    tpu.vector_store %arg11[%c0_10, %c0_11], %8 {strides = array<i32>} : memref<2x32xf32, #tpu.memory_space<vmem>>, vector<2x32xf32>,
    %c0_12 = arith.constant 0 : index
    %c0_13 = arith.constant 0 : index
    %10 = vector.load %arg4[%c0_12, %c0_13] : memref<32x96xf32, #tpu.memory_space<vmem>>, vector<32x96xf32>
    %c0_14 = arith.constant 0 : index
    %c0_15 = arith.constant 0 : index
    %11 = vector.load %arg6[%c0_14, %c0_15] : memref<1x96xf32, #tpu.memory_space<vmem>>, vector<1x96xf32>
    %c0_i32 = arith.constant 0 : i32
    %c1_i32 = arith.constant 1 : i32
    %12 = arith.muli %c0_i32, %c1_i32 : i32
    %c0_i32_16 = arith.constant 0 : i32
    %13 = arith.addi %c0_i32_16, %12 : i32
    %c0_17 = arith.constant 0 : index
    %c0_18 = arith.constant 0 : index
    %14 = vector.load %arg11[%c0_17, %c0_18] : memref<2x32xf32, #tpu.memory_space<vmem>>, vector<2x32xf32>
    %15 = arith.index_cast %13 : i32 to index
    %c0_19 = arith.constant 0 : index
    %c0_20 = arith.constant 0 : index
    %16 = vector.load %arg12[%15, %c0_19, %c0_20] : memref<8x2x96xf32, #tpu.memory_space<vmem>>, vector<1x2x96xf32>
    %17 = vector.shape_cast %16 : vector<1x2x96xf32> to vector<2x96xf32>
    %cst_21 = arith.constant dense<0.000000e+00> : vector<2x96xf32>
    %18 = tpu.matmul %14, %10, %cst_21 {dimension_numbers = #tpu.dot_dimension_numbers<[1], [0], [0], [1], [0, 0, 1, 1], [], []>, precision = #tpu.contract_precision<fp32>} : vector<2x32xf32>, vector<32x96xf32>, vector<2x96xf32> -> vector<2x96xf32>
    %19 = vector.broadcast %11 : vector<1x96xf32> to vector<2x96xf32>
    %20 = arith.addf %18, %19 : vector<2x96xf32>
    %21 = vector.extract_strided_slice %17 {offsets = [0, 0], sizes = [2, 32], strides = [1, 1]} : vector<2x96xf32> to vector<2x32xf32>
    %22 = vector.extract_strided_slice %20 {offsets = [0, 0], sizes = [2, 32], strides = [1, 1]} : vector<2x96xf32> to vector<2x32xf32>
    %23 = arith.addf %21, %22 : vector<2x32xf32>
    %24 = arith.negf %23 : vector<2x32xf32>
    %25 = math.exp %24 : vector<2x32xf32>
    %cst_22 = arith.constant 1.000000e+00 : f32
    %26 = vector.broadcast %cst_22 : f32 to vector<2x32xf32>
    %27 = arith.addf %26, %25 : vector<2x32xf32>
    %28 = arith.divf %26, %27 : vector<2x32xf32>
    %29 = vector.extract_strided_slice %17 {offsets = [0, 32], sizes = [2, 32], strides = [1, 1]} : vector<2x96xf32> to vector<2x32xf32>
    %30 = vector.extract_strided_slice %20 {offsets = [0, 32], sizes = [2, 32], strides = [1, 1]} : vector<2x96xf32> to vector<2x32xf32>
    %31 = arith.addf %29, %30 : vector<2x32xf32>
    %32 = arith.negf %31 : vector<2x32xf32>
    %33 = math.exp %32 : vector<2x32xf32>
    %cst_23 = arith.constant 1.000000e+00 : f32
    %34 = vector.broadcast %cst_23 : f32 to vector<2x32xf32>
    %35 = arith.addf %34, %33 : vector<2x32xf32>
    %36 = arith.divf %34, %35 : vector<2x32xf32>
    %37 = vector.extract_strided_slice %17 {offsets = [0, 64], sizes = [2, 32], strides = [1, 1]} : vector<2x96xf32> to vector<2x32xf32>
    %38 = vector.extract_strided_slice %20 {offsets = [0, 64], sizes = [2, 32], strides = [1, 1]} : vector<2x96xf32> to vector<2x32xf32>
    %39 = arith.mulf %28, %38 : vector<2x32xf32>
    %40 = arith.addf %37, %39 : vector<2x32xf32>
    %41 = math.tanh %40 : vector<2x32xf32>
    %cst_24 = arith.constant 1.000000e+00 : f32
    %42 = vector.broadcast %cst_24 : f32 to vector<2x32xf32>
    %43 = arith.subf %42, %36 : vector<2x32xf32>
    %44 = arith.mulf %43, %41 : vector<2x32xf32>
    %45 = arith.mulf %36, %14 : vector<2x32xf32>
    %46 = arith.addf %44, %45 : vector<2x32xf32>
    %c0_25 = arith.constant 0 : index
    %c0_26 = arith.constant 0 : index
    %47 = vector.load %arg11[%c0_25, %c0_26] : memref<2x32xf32, #tpu.memory_space<vmem>>, vector<2x32xf32>
    tpu.vector_store %arg11[%c0_25, %c0_26], %46 {strides = array<i32>} : memref<2x32xf32, #tpu.memory_space<vmem>>, vector<2x32xf32>,
    %48 = arith.index_cast %13 : i32 to index
    %c0_27 = arith.constant 0 : index
    %c0_28 = arith.constant 0 : index
    %49 = vector.load %arg13[%48, %c0_27, %c0_28] : memref<8x2x32xf32, #tpu.memory_space<vmem>>, vector<1x2x32xf32>
    %50 = vector.shape_cast %49 : vector<1x2x32xf32> to vector<2x32xf32>
    %51 = vector.shape_cast %46 : vector<2x32xf32> to vector<1x2x32xf32>
    tpu.vector_store %arg13[%48, %c0_27, %c0_28], %51 {strides = array<i32>} : memref<8x2x32xf32, #tpu.memory_space<vmem>>, vector<1x2x32xf32>,
    %c1_i32_29 = arith.constant 1 : i32
    %c1_i32_30 = arith.constant 1 : i32
    %52 = arith.muli %c1_i32_29, %c1_i32_30 : i32
    %c0_i32_31 = arith.constant 0 : i32
    %53 = arith.addi %c0_i32_31, %52 : i32
    %c0_32 = arith.constant 0 : index
    %c0_33 = arith.constant 0 : index
    %54 = vector.load %arg11[%c0_32, %c0_33] : memref<2x32xf32, #tpu.memory_space<vmem>>, vector<2x32xf32>
    %55 = arith.index_cast %53 : i32 to index
    %c0_34 = arith.constant 0 : index
    %c0_35 = arith.constant 0 : index
    %56 = vector.load %arg12[%55, %c0_34, %c0_35] : memref<8x2x96xf32, #tpu.memory_space<vmem>>, vector<1x2x96xf32>
    %57 = vector.shape_cast %56 : vector<1x2x96xf32> to vector<2x96xf32>
    %cst_36 = arith.constant dense<0.000000e+00> : vector<2x96xf32>
    %58 = tpu.matmul %54, %10, %cst_36 {dimension_numbers = #tpu.dot_dimension_numbers<[1], [0], [0], [1], [0, 0, 1, 1], [], []>, precision = #tpu.contract_precision<fp32>} : vector<2x32xf32>, vector<32x96xf32>, vector<2x96xf32> -> vector<2x96xf32>
    %59 = vector.broadcast %11 : vector<1x96xf32> to vector<2x96xf32>
    %60 = arith.addf %58, %59 : vector<2x96xf32>
    %61 = vector.extract_strided_slice %57 {offsets = [0, 0], sizes = [2, 32], strides = [1, 1]} : vector<2x96xf32> to vector<2x32xf32>
    %62 = vector.extract_strided_slice %60 {offsets = [0, 0], sizes = [2, 32], strides = [1, 1]} : vector<2x96xf32> to vector<2x32xf32>
    %63 = arith.addf %61, %62 : vector<2x32xf32>
    %64 = arith.negf %63 : vector<2x32xf32>
    %65 = math.exp %64 : vector<2x32xf32>
    %cst_37 = arith.constant 1.000000e+00 : f32
    %66 = vector.broadcast %cst_37 : f32 to vector<2x32xf32>
    %67 = arith.addf %66, %65 : vector<2x32xf32>
    %68 = arith.divf %66, %67 : vector<2x32xf32>
    %69 = vector.extract_strided_slice %57 {offsets = [0, 32], sizes = [2, 32], strides = [1, 1]} : vector<2x96xf32> to vector<2x32xf32>
    %70 = vector.extract_strided_slice %60 {offsets = [0, 32], sizes = [2, 32], strides = [1, 1]} : vector<2x96xf32> to vector<2x32xf32>
    %71 = arith.addf %69, %70 : vector<2x32xf32>
    %72 = arith.negf %71 : vector<2x32xf32>
    %73 = math.exp %72 : vector<2x32xf32>
    %cst_38 = arith.constant 1.000000e+00 : f32
    %74 = vector.broadcast %cst_38 : f32 to vector<2x32xf32>
    %75 = arith.addf %74, %73 : vector<2x32xf32>
    %76 = arith.divf %74, %75 : vector<2x32xf32>
    %77 = vector.extract_strided_slice %57 {offsets = [0, 64], sizes = [2, 32], strides = [1, 1]} : vector<2x96xf32> to vector<2x32xf32>
    %78 = vector.extract_strided_slice %60 {offsets = [0, 64], sizes = [2, 32], strides = [1, 1]} : vector<2x96xf32> to vector<2x32xf32>
    %79 = arith.mulf %68, %78 : vector<2x32xf32>
    %80 = arith.addf %77, %79 : vector<2x32xf32>
    %81 = math.tanh %80 : vector<2x32xf32>
    %cst_39 = arith.constant 1.000000e+00 : f32
    %82 = vector.broadcast %cst_39 : f32 to vector<2x32xf32>
    %83 = arith.subf %82, %76 : vector<2x32xf32>
    %84 = arith.mulf %83, %81 : vector<2x32xf32>
    %85 = arith.mulf %76, %54 : vector<2x32xf32>
    %86 = arith.addf %84, %85 : vector<2x32xf32>
    %c0_40 = arith.constant 0 : index
    %c0_41 = arith.constant 0 : index
    %87 = vector.load %arg11[%c0_40, %c0_41] : memref<2x32xf32, #tpu.memory_space<vmem>>, vector<2x32xf32>
    tpu.vector_store %arg11[%c0_40, %c0_41], %86 {strides = array<i32>} : memref<2x32xf32, #tpu.memory_space<vmem>>, vector<2x32xf32>,
    %88 = arith.index_cast %53 : i32 to index
    %c0_42 = arith.constant 0 : index
    %c0_43 = arith.constant 0 : index
    %89 = vector.load %arg13[%88, %c0_42, %c0_43] : memref<8x2x32xf32, #tpu.memory_space<vmem>>, vector<1x2x32xf32>
    %90 = vector.shape_cast %89 : vector<1x2x32xf32> to vector<2x32xf32>
    %91 = vector.shape_cast %86 : vector<2x32xf32> to vector<1x2x32xf32>
    tpu.vector_store %arg13[%88, %c0_42, %c0_43], %91 {strides = array<i32>} : memref<8x2x32xf32, #tpu.memory_space<vmem>>, vector<1x2x32xf32>,
    %c2_i32 = arith.constant 2 : i32
    %c1_i32_44 = arith.constant 1 : i32
    %92 = arith.muli %c2_i32, %c1_i32_44 : i32
    %c0_i32_45 = arith.constant 0 : i32
    %93 = arith.addi %c0_i32_45, %92 : i32
    %c0_46 = arith.constant 0 : index
    %c0_47 = arith.constant 0 : index
    %94 = vector.load %arg11[%c0_46, %c0_47] : memref<2x32xf32, #tpu.memory_space<vmem>>, vector<2x32xf32>
    %95 = arith.index_cast %93 : i32 to index
    %c0_48 = arith.constant 0 : index
    %c0_49 = arith.constant 0 : index
    %96 = vector.load %arg12[%95, %c0_48, %c0_49] : memref<8x2x96xf32, #tpu.memory_space<vmem>>, vector<1x2x96xf32>
    %97 = vector.shape_cast %96 : vector<1x2x96xf32> to vector<2x96xf32>
    %cst_50 = arith.constant dense<0.000000e+00> : vector<2x96xf32>
    %98 = tpu.matmul %94, %10, %cst_50 {dimension_numbers = #tpu.dot_dimension_numbers<[1], [0], [0], [1], [0, 0, 1, 1], [], []>, precision = #tpu.contract_precision<fp32>} : vector<2x32xf32>, vector<32x96xf32>, vector<2x96xf32> -> vector<2x96xf32>
    %99 = vector.broadcast %11 : vector<1x96xf32> to vector<2x96xf32>
    %100 = arith.addf %98, %99 : vector<2x96xf32>
    %101 = vector.extract_strided_slice %97 {offsets = [0, 0], sizes = [2, 32], strides = [1, 1]} : vector<2x96xf32> to vector<2x32xf32>
    %102 = vector.extract_strided_slice %100 {offsets = [0, 0], sizes = [2, 32], strides = [1, 1]} : vector<2x96xf32> to vector<2x32xf32>
    %103 = arith.addf %101, %102 : vector<2x32xf32>
    %104 = arith.negf %103 : vector<2x32xf32>
    %105 = math.exp %104 : vector<2x32xf32>
    %cst_51 = arith.constant 1.000000e+00 : f32
    %106 = vector.broadcast %cst_51 : f32 to vector<2x32xf32>
    %107 = arith.addf %106, %105 : vector<2x32xf32>
    %108 = arith.divf %106, %107 : vector<2x32xf32>
    %109 = vector.extract_strided_slice %97 {offsets = [0, 32], sizes = [2, 32], strides = [1, 1]} : vector<2x96xf32> to vector<2x32xf32>
    %110 = vector.extract_strided_slice %100 {offsets = [0, 32], sizes = [2, 32], strides = [1, 1]} : vector<2x96xf32> to vector<2x32xf32>
    %111 = arith.addf %109, %110 : vector<2x32xf32>
    %112 = arith.negf %111 : vector<2x32xf32>
    %113 = math.exp %112 : vector<2x32xf32>
    %cst_52 = arith.constant 1.000000e+00 : f32
    %114 = vector.broadcast %cst_52 : f32 to vector<2x32xf32>
    %115 = arith.addf %114, %113 : vector<2x32xf32>
    %116 = arith.divf %114, %115 : vector<2x32xf32>
    %117 = vector.extract_strided_slice %97 {offsets = [0, 64], sizes = [2, 32], strides = [1, 1]} : vector<2x96xf32> to vector<2x32xf32>
    %118 = vector.extract_strided_slice %100 {offsets = [0, 64], sizes = [2, 32], strides = [1, 1]} : vector<2x96xf32> to vector<2x32xf32>
    %119 = arith.mulf %108, %118 : vector<2x32xf32>
    %120 = arith.addf %117, %119 : vector<2x32xf32>
    %121 = math.tanh %120 : vector<2x32xf32>
    %cst_53 = arith.constant 1.000000e+00 : f32
    %122 = vector.broadcast %cst_53 : f32 to vector<2x32xf32>
    %123 = arith.subf %122, %116 : vector<2x32xf32>
    %124 = arith.mulf %123, %121 : vector<2x32xf32>
    %125 = arith.mulf %116, %94 : vector<2x32xf32>
    %126 = arith.addf %124, %125 : vector<2x32xf32>
    %c0_54 = arith.constant 0 : index
    %c0_55 = arith.constant 0 : index
    %127 = vector.load %arg11[%c0_54, %c0_55] : memref<2x32xf32, #tpu.memory_space<vmem>>, vector<2x32xf32>
    tpu.vector_store %arg11[%c0_54, %c0_55], %126 {strides = array<i32>} : memref<2x32xf32, #tpu.memory_space<vmem>>, vector<2x32xf32>,
    %128 = arith.index_cast %93 : i32 to index
    %c0_56 = arith.constant 0 : index
    %c0_57 = arith.constant 0 : index
    %129 = vector.load %arg13[%128, %c0_56, %c0_57] : memref<8x2x32xf32, #tpu.memory_space<vmem>>, vector<1x2x32xf32>
    %130 = vector.shape_cast %129 : vector<1x2x32xf32> to vector<2x32xf32>
    %131 = vector.shape_cast %126 : vector<2x32xf32> to vector<1x2x32xf32>
    tpu.vector_store %arg13[%128, %c0_56, %c0_57], %131 {strides = array<i32>} : memref<8x2x32xf32, #tpu.memory_space<vmem>>, vector<1x2x32xf32>,
    %c3_i32 = arith.constant 3 : i32
    %c1_i32_58 = arith.constant 1 : i32
    %132 = arith.muli %c3_i32, %c1_i32_58 : i32
    %c0_i32_59 = arith.constant 0 : i32
    %133 = arith.addi %c0_i32_59, %132 : i32
    %c0_60 = arith.constant 0 : index
    %c0_61 = arith.constant 0 : index
    %134 = vector.load %arg11[%c0_60, %c0_61] : memref<2x32xf32, #tpu.memory_space<vmem>>, vector<2x32xf32>
    %135 = arith.index_cast %133 : i32 to index
    %c0_62 = arith.constant 0 : index
    %c0_63 = arith.constant 0 : index
    %136 = vector.load %arg12[%135, %c0_62, %c0_63] : memref<8x2x96xf32, #tpu.memory_space<vmem>>, vector<1x2x96xf32>
    %137 = vector.shape_cast %136 : vector<1x2x96xf32> to vector<2x96xf32>
    %cst_64 = arith.constant dense<0.000000e+00> : vector<2x96xf32>
    %138 = tpu.matmul %134, %10, %cst_64 {dimension_numbers = #tpu.dot_dimension_numbers<[1], [0], [0], [1], [0, 0, 1, 1], [], []>, precision = #tpu.contract_precision<fp32>} : vector<2x32xf32>, vector<32x96xf32>, vector<2x96xf32> -> vector<2x96xf32>
    %139 = vector.broadcast %11 : vector<1x96xf32> to vector<2x96xf32>
    %140 = arith.addf %138, %139 : vector<2x96xf32>
    %141 = vector.extract_strided_slice %137 {offsets = [0, 0], sizes = [2, 32], strides = [1, 1]} : vector<2x96xf32> to vector<2x32xf32>
    %142 = vector.extract_strided_slice %140 {offsets = [0, 0], sizes = [2, 32], strides = [1, 1]} : vector<2x96xf32> to vector<2x32xf32>
    %143 = arith.addf %141, %142 : vector<2x32xf32>
    %144 = arith.negf %143 : vector<2x32xf32>
    %145 = math.exp %144 : vector<2x32xf32>
    %cst_65 = arith.constant 1.000000e+00 : f32
    %146 = vector.broadcast %cst_65 : f32 to vector<2x32xf32>
    %147 = arith.addf %146, %145 : vector<2x32xf32>
    %148 = arith.divf %146, %147 : vector<2x32xf32>
    %149 = vector.extract_strided_slice %137 {offsets = [0, 32], sizes = [2, 32], strides = [1, 1]} : vector<2x96xf32> to vector<2x32xf32>
    %150 = vector.extract_strided_slice %140 {offsets = [0, 32], sizes = [2, 32], strides = [1, 1]} : vector<2x96xf32> to vector<2x32xf32>
    %151 = arith.addf %149, %150 : vector<2x32xf32>
    %152 = arith.negf %151 : vector<2x32xf32>
    %153 = math.exp %152 : vector<2x32xf32>
    %cst_66 = arith.constant 1.000000e+00 : f32
    %154 = vector.broadcast %cst_66 : f32 to vector<2x32xf32>
    %155 = arith.addf %154, %153 : vector<2x32xf32>
    %156 = arith.divf %154, %155 : vector<2x32xf32>
    %157 = vector.extract_strided_slice %137 {offsets = [0, 64], sizes = [2, 32], strides = [1, 1]} : vector<2x96xf32> to vector<2x32xf32>
    %158 = vector.extract_strided_slice %140 {offsets = [0, 64], sizes = [2, 32], strides = [1, 1]} : vector<2x96xf32> to vector<2x32xf32>
    %159 = arith.mulf %148, %158 : vector<2x32xf32>
    %160 = arith.addf %157, %159 : vector<2x32xf32>
    %161 = math.tanh %160 : vector<2x32xf32>
    %cst_67 = arith.constant 1.000000e+00 : f32
    %162 = vector.broadcast %cst_67 : f32 to vector<2x32xf32>
    %163 = arith.subf %162, %156 : vector<2x32xf32>
    %164 = arith.mulf %163, %161 : vector<2x32xf32>
    %165 = arith.mulf %156, %134 : vector<2x32xf32>
    %166 = arith.addf %164, %165 : vector<2x32xf32>
    %c0_68 = arith.constant 0 : index
    %c0_69 = arith.constant 0 : index
    %167 = vector.load %arg11[%c0_68, %c0_69] : memref<2x32xf32, #tpu.memory_space<vmem>>, vector<2x32xf32>
    tpu.vector_store %arg11[%c0_68, %c0_69], %166 {strides = array<i32>} : memref<2x32xf32, #tpu.memory_space<vmem>>, vector<2x32xf32>,
    %168 = arith.index_cast %133 : i32 to index
    %c0_70 = arith.constant 0 : index
    %c0_71 = arith.constant 0 : index
    %169 = vector.load %arg13[%168, %c0_70, %c0_71] : memref<8x2x32xf32, #tpu.memory_space<vmem>>, vector<1x2x32xf32>
    %170 = vector.shape_cast %169 : vector<1x2x32xf32> to vector<2x32xf32>
    %171 = vector.shape_cast %166 : vector<2x32xf32> to vector<1x2x32xf32>
    tpu.vector_store %arg13[%168, %c0_70, %c0_71], %171 {strides = array<i32>} : memref<8x2x32xf32, #tpu.memory_space<vmem>>, vector<1x2x32xf32>,
    %c4_i32 = arith.constant 4 : i32
    %c1_i32_72 = arith.constant 1 : i32
    %172 = arith.muli %c4_i32, %c1_i32_72 : i32
    %c0_i32_73 = arith.constant 0 : i32
    %173 = arith.addi %c0_i32_73, %172 : i32
    %c0_74 = arith.constant 0 : index
    %c0_75 = arith.constant 0 : index
    %174 = vector.load %arg11[%c0_74, %c0_75] : memref<2x32xf32, #tpu.memory_space<vmem>>, vector<2x32xf32>
    %175 = arith.index_cast %173 : i32 to index
    %c0_76 = arith.constant 0 : index
    %c0_77 = arith.constant 0 : index
    %176 = vector.load %arg12[%175, %c0_76, %c0_77] : memref<8x2x96xf32, #tpu.memory_space<vmem>>, vector<1x2x96xf32>
    %177 = vector.shape_cast %176 : vector<1x2x96xf32> to vector<2x96xf32>
    %cst_78 = arith.constant dense<0.000000e+00> : vector<2x96xf32>
    %178 = tpu.matmul %174, %10, %cst_78 {dimension_numbers = #tpu.dot_dimension_numbers<[1], [0], [0], [1], [0, 0, 1, 1], [], []>, precision = #tpu.contract_precision<fp32>} : vector<2x32xf32>, vector<32x96xf32>, vector<2x96xf32> -> vector<2x96xf32>
    %179 = vector.broadcast %11 : vector<1x96xf32> to vector<2x96xf32>
    %180 = arith.addf %178, %179 : vector<2x96xf32>
    %181 = vector.extract_strided_slice %177 {offsets = [0, 0], sizes = [2, 32], strides = [1, 1]} : vector<2x96xf32> to vector<2x32xf32>
    %182 = vector.extract_strided_slice %180 {offsets = [0, 0], sizes = [2, 32], strides = [1, 1]} : vector<2x96xf32> to vector<2x32xf32>
    %183 = arith.addf %181, %182 : vector<2x32xf32>
    %184 = arith.negf %183 : vector<2x32xf32>
    %185 = math.exp %184 : vector<2x32xf32>
    %cst_79 = arith.constant 1.000000e+00 : f32
    %186 = vector.broadcast %cst_79 : f32 to vector<2x32xf32>
    %187 = arith.addf %186, %185 : vector<2x32xf32>
    %188 = arith.divf %186, %187 : vector<2x32xf32>
    %189 = vector.extract_strided_slice %177 {offsets = [0, 32], sizes = [2, 32], strides = [1, 1]} : vector<2x96xf32> to vector<2x32xf32>
    %190 = vector.extract_strided_slice %180 {offsets = [0, 32], sizes = [2, 32], strides = [1, 1]} : vector<2x96xf32> to vector<2x32xf32>
    %191 = arith.addf %189, %190 : vector<2x32xf32>
    %192 = arith.negf %191 : vector<2x32xf32>
    %193 = math.exp %192 : vector<2x32xf32>
    %cst_80 = arith.constant 1.000000e+00 : f32
    %194 = vector.broadcast %cst_80 : f32 to vector<2x32xf32>
    %195 = arith.addf %194, %193 : vector<2x32xf32>
    %196 = arith.divf %194, %195 : vector<2x32xf32>
    %197 = vector.extract_strided_slice %177 {offsets = [0, 64], sizes = [2, 32], strides = [1, 1]} : vector<2x96xf32> to vector<2x32xf32>
    %198 = vector.extract_strided_slice %180 {offsets = [0, 64], sizes = [2, 32], strides = [1, 1]} : vector<2x96xf32> to vector<2x32xf32>
    %199 = arith.mulf %188, %198 : vector<2x32xf32>
    %200 = arith.addf %197, %199 : vector<2x32xf32>
    %201 = math.tanh %200 : vector<2x32xf32>
    %cst_81 = arith.constant 1.000000e+00 : f32
    %202 = vector.broadcast %cst_81 : f32 to vector<2x32xf32>
    %203 = arith.subf %202, %196 : vector<2x32xf32>
    %204 = arith.mulf %203, %201 : vector<2x32xf32>
    %205 = arith.mulf %196, %174 : vector<2x32xf32>
    %206 = arith.addf %204, %205 : vector<2x32xf32>
    %c0_82 = arith.constant 0 : index
    %c0_83 = arith.constant 0 : index
    %207 = vector.load %arg11[%c0_82, %c0_83] : memref<2x32xf32, #tpu.memory_space<vmem>>, vector<2x32xf32>
    tpu.vector_store %arg11[%c0_82, %c0_83], %206 {strides = array<i32>} : memref<2x32xf32, #tpu.memory_space<vmem>>, vector<2x32xf32>,
    %208 = arith.index_cast %173 : i32 to index
    %c0_84 = arith.constant 0 : index
    %c0_85 = arith.constant 0 : index
    %209 = vector.load %arg13[%208, %c0_84, %c0_85] : memref<8x2x32xf32, #tpu.memory_space<vmem>>, vector<1x2x32xf32>
    %210 = vector.shape_cast %209 : vector<1x2x32xf32> to vector<2x32xf32>
    %211 = vector.shape_cast %206 : vector<2x32xf32> to vector<1x2x32xf32>
    tpu.vector_store %arg13[%208, %c0_84, %c0_85], %211 {strides = array<i32>} : memref<8x2x32xf32, #tpu.memory_space<vmem>>, vector<1x2x32xf32>,
    %c5_i32 = arith.constant 5 : i32
    %c1_i32_86 = arith.constant 1 : i32
    %212 = arith.muli %c5_i32, %c1_i32_86 : i32
    %c0_i32_87 = arith.constant 0 : i32
    %213 = arith.addi %c0_i32_87, %212 : i32
    %c0_88 = arith.constant 0 : index
    %c0_89 = arith.constant 0 : index
    %214 = vector.load %arg11[%c0_88, %c0_89] : memref<2x32xf32, #tpu.memory_space<vmem>>, vector<2x32xf32>
    %215 = arith.index_cast %213 : i32 to index
    %c0_90 = arith.constant 0 : index
    %c0_91 = arith.constant 0 : index
    %216 = vector.load %arg12[%215, %c0_90, %c0_91] : memref<8x2x96xf32, #tpu.memory_space<vmem>>, vector<1x2x96xf32>
    %217 = vector.shape_cast %216 : vector<1x2x96xf32> to vector<2x96xf32>
    %cst_92 = arith.constant dense<0.000000e+00> : vector<2x96xf32>
    %218 = tpu.matmul %214, %10, %cst_92 {dimension_numbers = #tpu.dot_dimension_numbers<[1], [0], [0], [1], [0, 0, 1, 1], [], []>, precision = #tpu.contract_precision<fp32>} : vector<2x32xf32>, vector<32x96xf32>, vector<2x96xf32> -> vector<2x96xf32>
    %219 = vector.broadcast %11 : vector<1x96xf32> to vector<2x96xf32>
    %220 = arith.addf %218, %219 : vector<2x96xf32>
    %221 = vector.extract_strided_slice %217 {offsets = [0, 0], sizes = [2, 32], strides = [1, 1]} : vector<2x96xf32> to vector<2x32xf32>
    %222 = vector.extract_strided_slice %220 {offsets = [0, 0], sizes = [2, 32], strides = [1, 1]} : vector<2x96xf32> to vector<2x32xf32>
    %223 = arith.addf %221, %222 : vector<2x32xf32>
    %224 = arith.negf %223 : vector<2x32xf32>
    %225 = math.exp %224 : vector<2x32xf32>
    %cst_93 = arith.constant 1.000000e+00 : f32
    %226 = vector.broadcast %cst_93 : f32 to vector<2x32xf32>
    %227 = arith.addf %226, %225 : vector<2x32xf32>
    %228 = arith.divf %226, %227 : vector<2x32xf32>
    %229 = vector.extract_strided_slice %217 {offsets = [0, 32], sizes = [2, 32], strides = [1, 1]} : vector<2x96xf32> to vector<2x32xf32>
    %230 = vector.extract_strided_slice %220 {offsets = [0, 32], sizes = [2, 32], strides = [1, 1]} : vector<2x96xf32> to vector<2x32xf32>
    %231 = arith.addf %229, %230 : vector<2x32xf32>
    %232 = arith.negf %231 : vector<2x32xf32>
    %233 = math.exp %232 : vector<2x32xf32>
    %cst_94 = arith.constant 1.000000e+00 : f32
    %234 = vector.broadcast %cst_94 : f32 to vector<2x32xf32>
    %235 = arith.addf %234, %233 : vector<2x32xf32>
    %236 = arith.divf %234, %235 : vector<2x32xf32>
    %237 = vector.extract_strided_slice %217 {offsets = [0, 64], sizes = [2, 32], strides = [1, 1]} : vector<2x96xf32> to vector<2x32xf32>
    %238 = vector.extract_strided_slice %220 {offsets = [0, 64], sizes = [2, 32], strides = [1, 1]} : vector<2x96xf32> to vector<2x32xf32>
    %239 = arith.mulf %228, %238 : vector<2x32xf32>
    %240 = arith.addf %237, %239 : vector<2x32xf32>
    %241 = math.tanh %240 : vector<2x32xf32>
    %cst_95 = arith.constant 1.000000e+00 : f32
    %242 = vector.broadcast %cst_95 : f32 to vector<2x32xf32>
    %243 = arith.subf %242, %236 : vector<2x32xf32>
    %244 = arith.mulf %243, %241 : vector<2x32xf32>
    %245 = arith.mulf %236, %214 : vector<2x32xf32>
    %246 = arith.addf %244, %245 : vector<2x32xf32>
    %c0_96 = arith.constant 0 : index
    %c0_97 = arith.constant 0 : index
    %247 = vector.load %arg11[%c0_96, %c0_97] : memref<2x32xf32, #tpu.memory_space<vmem>>, vector<2x32xf32>
    tpu.vector_store %arg11[%c0_96, %c0_97], %246 {strides = array<i32>} : memref<2x32xf32, #tpu.memory_space<vmem>>, vector<2x32xf32>,
    %248 = arith.index_cast %213 : i32 to index
    %c0_98 = arith.constant 0 : index
    %c0_99 = arith.constant 0 : index
    %249 = vector.load %arg13[%248, %c0_98, %c0_99] : memref<8x2x32xf32, #tpu.memory_space<vmem>>, vector<1x2x32xf32>
    %250 = vector.shape_cast %249 : vector<1x2x32xf32> to vector<2x32xf32>
    %251 = vector.shape_cast %246 : vector<2x32xf32> to vector<1x2x32xf32>
    tpu.vector_store %arg13[%248, %c0_98, %c0_99], %251 {strides = array<i32>} : memref<8x2x32xf32, #tpu.memory_space<vmem>>, vector<1x2x32xf32>,
    %c6_i32 = arith.constant 6 : i32
    %c1_i32_100 = arith.constant 1 : i32
    %252 = arith.muli %c6_i32, %c1_i32_100 : i32
    %c0_i32_101 = arith.constant 0 : i32
    %253 = arith.addi %c0_i32_101, %252 : i32
    %c0_102 = arith.constant 0 : index
    %c0_103 = arith.constant 0 : index
    %254 = vector.load %arg11[%c0_102, %c0_103] : memref<2x32xf32, #tpu.memory_space<vmem>>, vector<2x32xf32>
    %255 = arith.index_cast %253 : i32 to index
    %c0_104 = arith.constant 0 : index
    %c0_105 = arith.constant 0 : index
    %256 = vector.load %arg12[%255, %c0_104, %c0_105] : memref<8x2x96xf32, #tpu.memory_space<vmem>>, vector<1x2x96xf32>
    %257 = vector.shape_cast %256 : vector<1x2x96xf32> to vector<2x96xf32>
    %cst_106 = arith.constant dense<0.000000e+00> : vector<2x96xf32>
    %258 = tpu.matmul %254, %10, %cst_106 {dimension_numbers = #tpu.dot_dimension_numbers<[1], [0], [0], [1], [0, 0, 1, 1], [], []>, precision = #tpu.contract_precision<fp32>} : vector<2x32xf32>, vector<32x96xf32>, vector<2x96xf32> -> vector<2x96xf32>
    %259 = vector.broadcast %11 : vector<1x96xf32> to vector<2x96xf32>
    %260 = arith.addf %258, %259 : vector<2x96xf32>
    %261 = vector.extract_strided_slice %257 {offsets = [0, 0], sizes = [2, 32], strides = [1, 1]} : vector<2x96xf32> to vector<2x32xf32>
    %262 = vector.extract_strided_slice %260 {offsets = [0, 0], sizes = [2, 32], strides = [1, 1]} : vector<2x96xf32> to vector<2x32xf32>
    %263 = arith.addf %261, %262 : vector<2x32xf32>
    %264 = arith.negf %263 : vector<2x32xf32>
    %265 = math.exp %264 : vector<2x32xf32>
    %cst_107 = arith.constant 1.000000e+00 : f32
    %266 = vector.broadcast %cst_107 : f32 to vector<2x32xf32>
    %267 = arith.addf %266, %265 : vector<2x32xf32>
    %268 = arith.divf %266, %267 : vector<2x32xf32>
    %269 = vector.extract_strided_slice %257 {offsets = [0, 32], sizes = [2, 32], strides = [1, 1]} : vector<2x96xf32> to vector<2x32xf32>
    %270 = vector.extract_strided_slice %260 {offsets = [0, 32], sizes = [2, 32], strides = [1, 1]} : vector<2x96xf32> to vector<2x32xf32>
    %271 = arith.addf %269, %270 : vector<2x32xf32>
    %272 = arith.negf %271 : vector<2x32xf32>
    %273 = math.exp %272 : vector<2x32xf32>
    %cst_108 = arith.constant 1.000000e+00 : f32
    %274 = vector.broadcast %cst_108 : f32 to vector<2x32xf32>
    %275 = arith.addf %274, %273 : vector<2x32xf32>
    %276 = arith.divf %274, %275 : vector<2x32xf32>
    %277 = vector.extract_strided_slice %257 {offsets = [0, 64], sizes = [2, 32], strides = [1, 1]} : vector<2x96xf32> to vector<2x32xf32>
    %278 = vector.extract_strided_slice %260 {offsets = [0, 64], sizes = [2, 32], strides = [1, 1]} : vector<2x96xf32> to vector<2x32xf32>
    %279 = arith.mulf %268, %278 : vector<2x32xf32>
    %280 = arith.addf %277, %279 : vector<2x32xf32>
    %281 = math.tanh %280 : vector<2x32xf32>
    %cst_109 = arith.constant 1.000000e+00 : f32
    %282 = vector.broadcast %cst_109 : f32 to vector<2x32xf32>
    %283 = arith.subf %282, %276 : vector<2x32xf32>
    %284 = arith.mulf %283, %281 : vector<2x32xf32>
    %285 = arith.mulf %276, %254 : vector<2x32xf32>
    %286 = arith.addf %284, %285 : vector<2x32xf32>
    %c0_110 = arith.constant 0 : index
    %c0_111 = arith.constant 0 : index
    %287 = vector.load %arg11[%c0_110, %c0_111] : memref<2x32xf32, #tpu.memory_space<vmem>>, vector<2x32xf32>
    tpu.vector_store %arg11[%c0_110, %c0_111], %286 {strides = array<i32>} : memref<2x32xf32, #tpu.memory_space<vmem>>, vector<2x32xf32>,
    %288 = arith.index_cast %253 : i32 to index
    %c0_112 = arith.constant 0 : index
    %c0_113 = arith.constant 0 : index
    %289 = vector.load %arg13[%288, %c0_112, %c0_113] : memref<8x2x32xf32, #tpu.memory_space<vmem>>, vector<1x2x32xf32>
    %290 = vector.shape_cast %289 : vector<1x2x32xf32> to vector<2x32xf32>
    %291 = vector.shape_cast %286 : vector<2x32xf32> to vector<1x2x32xf32>
    tpu.vector_store %arg13[%288, %c0_112, %c0_113], %291 {strides = array<i32>} : memref<8x2x32xf32, #tpu.memory_space<vmem>>, vector<1x2x32xf32>,
    %c7_i32 = arith.constant 7 : i32
    %c1_i32_114 = arith.constant 1 : i32
    %292 = arith.muli %c7_i32, %c1_i32_114 : i32
    %c0_i32_115 = arith.constant 0 : i32
    %293 = arith.addi %c0_i32_115, %292 : i32
    %c0_116 = arith.constant 0 : index
    %c0_117 = arith.constant 0 : index
    %294 = vector.load %arg11[%c0_116, %c0_117] : memref<2x32xf32, #tpu.memory_space<vmem>>, vector<2x32xf32>
    %295 = arith.index_cast %293 : i32 to index
    %c0_118 = arith.constant 0 : index
    %c0_119 = arith.constant 0 : index
    %296 = vector.load %arg12[%295, %c0_118, %c0_119] : memref<8x2x96xf32, #tpu.memory_space<vmem>>, vector<1x2x96xf32>
    %297 = vector.shape_cast %296 : vector<1x2x96xf32> to vector<2x96xf32>
    %cst_120 = arith.constant dense<0.000000e+00> : vector<2x96xf32>
    %298 = tpu.matmul %294, %10, %cst_120 {dimension_numbers = #tpu.dot_dimension_numbers<[1], [0], [0], [1], [0, 0, 1, 1], [], []>, precision = #tpu.contract_precision<fp32>} : vector<2x32xf32>, vector<32x96xf32>, vector<2x96xf32> -> vector<2x96xf32>
    %299 = vector.broadcast %11 : vector<1x96xf32> to vector<2x96xf32>
    %300 = arith.addf %298, %299 : vector<2x96xf32>
    %301 = vector.extract_strided_slice %297 {offsets = [0, 0], sizes = [2, 32], strides = [1, 1]} : vector<2x96xf32> to vector<2x32xf32>
    %302 = vector.extract_strided_slice %300 {offsets = [0, 0], sizes = [2, 32], strides = [1, 1]} : vector<2x96xf32> to vector<2x32xf32>
    %303 = arith.addf %301, %302 : vector<2x32xf32>
    %304 = arith.negf %303 : vector<2x32xf32>
    %305 = math.exp %304 : vector<2x32xf32>
    %cst_121 = arith.constant 1.000000e+00 : f32
    %306 = vector.broadcast %cst_121 : f32 to vector<2x32xf32>
    %307 = arith.addf %306, %305 : vector<2x32xf32>
    %308 = arith.divf %306, %307 : vector<2x32xf32>
    %309 = vector.extract_strided_slice %297 {offsets = [0, 32], sizes = [2, 32], strides = [1, 1]} : vector<2x96xf32> to vector<2x32xf32>
    %310 = vector.extract_strided_slice %300 {offsets = [0, 32], sizes = [2, 32], strides = [1, 1]} : vector<2x96xf32> to vector<2x32xf32>
    %311 = arith.addf %309, %310 : vector<2x32xf32>
    %312 = arith.negf %311 : vector<2x32xf32>
    %313 = math.exp %312 : vector<2x32xf32>
    %cst_122 = arith.constant 1.000000e+00 : f32
    %314 = vector.broadcast %cst_122 : f32 to vector<2x32xf32>
    %315 = arith.addf %314, %313 : vector<2x32xf32>
    %316 = arith.divf %314, %315 : vector<2x32xf32>
    %317 = vector.extract_strided_slice %297 {offsets = [0, 64], sizes = [2, 32], strides = [1, 1]} : vector<2x96xf32> to vector<2x32xf32>
    %318 = vector.extract_strided_slice %300 {offsets = [0, 64], sizes = [2, 32], strides = [1, 1]} : vector<2x96xf32> to vector<2x32xf32>
    %319 = arith.mulf %308, %318 : vector<2x32xf32>
    %320 = arith.addf %317, %319 : vector<2x32xf32>
    %321 = math.tanh %320 : vector<2x32xf32>
    %cst_123 = arith.constant 1.000000e+00 : f32
    %322 = vector.broadcast %cst_123 : f32 to vector<2x32xf32>
    %323 = arith.subf %322, %316 : vector<2x32xf32>
    %324 = arith.mulf %323, %321 : vector<2x32xf32>
    %325 = arith.mulf %316, %294 : vector<2x32xf32>
    %326 = arith.addf %324, %325 : vector<2x32xf32>
    %c0_124 = arith.constant 0 : index
    %c0_125 = arith.constant 0 : index
    %327 = vector.load %arg11[%c0_124, %c0_125] : memref<2x32xf32, #tpu.memory_space<vmem>>, vector<2x32xf32>
    tpu.vector_store %arg11[%c0_124, %c0_125], %326 {strides = array<i32>} : memref<2x32xf32, #tpu.memory_space<vmem>>, vector<2x32xf32>,
    %328 = arith.index_cast %293 : i32 to index
    %c0_126 = arith.constant 0 : index
    %c0_127 = arith.constant 0 : index
    %329 = vector.load %arg13[%328, %c0_126, %c0_127] : memref<8x2x32xf32, #tpu.memory_space<vmem>>, vector<1x2x32xf32>
    %330 = vector.shape_cast %329 : vector<1x2x32xf32> to vector<2x32xf32>
    %331 = vector.shape_cast %326 : vector<2x32xf32> to vector<1x2x32xf32>
    tpu.vector_store %arg13[%328, %c0_126, %c0_127], %331 {strides = array<i32>} : memref<8x2x32xf32, #tpu.memory_space<vmem>>, vector<1x2x32xf32>,
    %c8_i32 = arith.constant 8 : i32
    %c0_128 = arith.constant 0 : index
    %c0_129 = arith.constant 0 : index
    %c0_130 = arith.constant 0 : index
    %332 = vector.load %arg13[%c0_128, %c0_129, %c0_130] : memref<8x2x32xf32, #tpu.memory_space<vmem>>, vector<8x2x32xf32>
    %333 = vector.shape_cast %332 : vector<8x2x32xf32> to vector<16x32xf32>
    %c0_131 = arith.constant 0 : index
    %c0_132 = arith.constant 0 : index
    %334 = vector.load %arg7[%c0_131, %c0_132] : memref<32x32xf32, #tpu.memory_space<vmem>>, vector<32x32xf32>
    %cst_133 = arith.constant dense<0.000000e+00> : vector<16x32xf32>
    %335 = tpu.matmul %333, %334, %cst_133 {dimension_numbers = #tpu.dot_dimension_numbers<[1], [0], [0], [1], [0, 0, 1, 1], [], []>, precision = #tpu.contract_precision<fp32>} : vector<16x32xf32>, vector<32x32xf32>, vector<16x32xf32> -> vector<16x32xf32>
    %c0_134 = arith.constant 0 : index
    %c0_135 = arith.constant 0 : index
    %336 = vector.load %arg8[%c0_134, %c0_135] : memref<1x32xf32, #tpu.memory_space<vmem>>, vector<1x32xf32>
    %337 = vector.broadcast %336 : vector<1x32xf32> to vector<16x32xf32>
    %338 = arith.addf %335, %337 : vector<16x32xf32>
    %c0_136 = arith.constant 0 : index
    %c0_137 = arith.constant 0 : index
    %339 = vector.load %arg9[%c0_136, %c0_137] : memref<16x32xf32, #tpu.memory_space<vmem>>, vector<16x32xf32>
    tpu.vector_store %arg9[%c0_136, %c0_137], %338 {strides = array<i32>} : memref<16x32xf32, #tpu.memory_space<vmem>>, vector<16x32xf32>,
    %c0_138 = arith.constant 0 : index
    %c0_139 = arith.constant 0 : index
    %340 = vector.load %arg11[%c0_138, %c0_139] : memref<2x32xf32, #tpu.memory_space<vmem>>, vector<2x32xf32>
    %c0_140 = arith.constant 0 : index
    %c0_141 = arith.constant 0 : index
    %341 = vector.load %arg10[%c0_140, %c0_141] : memref<2x32xf32, #tpu.memory_space<vmem>>, vector<2x32xf32>
    tpu.vector_store %arg10[%c0_140, %c0_141], %340 {strides = array<i32>} : memref<2x32xf32, #tpu.memory_space<vmem>>, vector<2x32xf32>,
    return
  }
  func.func @transform_0(%arg0: i32) -> (i32, i32) {
    %c0_i32 = arith.constant 0 : i32
    %c0_i32_0 = arith.constant 0 : i32
    %c0_i32_1 = arith.constant 0 : i32
    return %c0_i32, %c0_i32_0 : i32, i32
  }
  func.func @transform_1(%arg0: i32) -> (i32, i32) {
    %c0_i32 = arith.constant 0 : i32
    %c0_i32_0 = arith.constant 0 : i32
    %c0_i32_1 = arith.constant 0 : i32
    return %c0_i32, %c0_i32_0 : i32, i32
  }
  func.func @transform_2(%arg0: i32) -> (i32, i32) {
    %c0_i32 = arith.constant 0 : i32
    %c0_i32_0 = arith.constant 0 : i32
    %c0_i32_1 = arith.constant 0 : i32
    return %c0_i32, %c0_i32_0 : i32, i32
  }
  func.func @transform_3(%arg0: i32) -> (i32, i32) {
    %c0_i32 = arith.constant 0 : i32
    %c0_i32_0 = arith.constant 0 : i32
    %c0_i32_1 = arith.constant 0 : i32
    return %c0_i32, %c0_i32_0 : i32, i32
  }
  func.func @transform_4(%arg0: i32) -> (i32, i32) {
    %c0_i32 = arith.constant 0 : i32
    %c0_i32_0 = arith.constant 0 : i32
    %c0_i32_1 = arith.constant 0 : i32
    return %c0_i32, %c0_i32_0 : i32, i32
  }
  func.func @transform_5(%arg0: i32) -> (i32, i32) {
    %c0_i32 = arith.constant 0 : i32
    %c0_i32_0 = arith.constant 0 : i32
    %c0_i32_1 = arith.constant 0 : i32
    return %c0_i32, %c0_i32_0 : i32, i32
  }
  func.func @transform_6(%arg0: i32) -> (i32, i32) {
    %c0_i32 = arith.constant 0 : i32
    %c0_i32_0 = arith.constant 0 : i32
    %c0_i32_1 = arith.constant 0 : i32
    return %c0_i32, %c0_i32_0 : i32, i32
  }
  func.func @transform_7(%arg0: i32) -> (i32, i32) {
    %c0_i32 = arith.constant 0 : i32
    %c0_i32_0 = arith.constant 0 : i32
    %c0_i32_1 = arith.constant 0 : i32
    return %c0_i32, %c0_i32_0 : i32, i32
  }
  func.func @transform_8(%arg0: i32) -> (i32, i32) {
    %c0_i32 = arith.constant 0 : i32
    %c0_i32_0 = arith.constant 0 : i32
    %c0_i32_1 = arith.constant 0 : i32
    return %c0_i32, %c0_i32_0 : i32, i32
  }
  func.func @transform_9(%arg0: i32) -> (i32, i32) {
    %c0_i32 = arith.constant 0 : i32
    %c0_i32_0 = arith.constant 0 : i32
    %c0_i32_1 = arith.constant 0 : i32
    return %c0_i32, %c0_i32_0 : i32, i32
  }
}

</mosaic_0001>

<bundles_post_ra>
// kernel: tpu_custom_call.1
= control target key start
LH: loop header
LB: loop body
LE: loop exit
PB: predicated region body
PF: predicated region fallthrough
CT: control target
= control target key end

     0   :  { %15 = vsyncpa [#allocation6], 0  ;;  %s3393_s0 = inlined_call_operand.hbm [shape: f32[16,32], index: 0, kind: input, shape index: {}]   ;;  %s3394_s1 = inlined_call_operand.hbm [shape: f32[2,32], index: 1, kind: input, shape index: {}]   ;;  %s3395_s2 = inlined_call_operand.hbm [shape: f32[32,96], index: 2, kind: input, shape index: {}]   ;;  %s3396_s3 = inlined_call_operand.hbm [shape: f32[32,96], index: 3, kind: input, shape index: {}]   ;;  %s3397_s4 = inlined_call_operand.vmem [shape: f32[1,96], index: 4, kind: input, shape index: {}]   ;;  %s3398_s5 = inlined_call_operand.vmem [shape: f32[1,96], index: 5, kind: input, shape index: {}]   ;;  %s3399_s6 = inlined_call_operand.hbm [shape: f32[32,32], index: 6, kind: input, shape index: {}]   ;;  %s3400_s7 = inlined_call_operand.vmem [shape: f32[1,32], index: 7, kind: input, shape index: {}]   ;;  %s3401_s8 = inlined_call_operand.hbm [shape: f32[16,32], index: 8, kind: output, shape index: {0}]   ;;  %s3402_s9 = inlined_call_operand.hbm [shape: f32[2,32], index: 9, kind: output, shape index: {1}]  }
   0x1   :  { %16 = vsyncpa [#allocation9], 0 }
   0x2   :  { %17 = vsyncpa [#allocation12], 0 }
   0x3   :  { %18 = vsyncpa [#allocation7], 0  ;;  %s38_s11 = sshll.u32 %s3394_s1, 4  ;;  %s39_s11 = int_to_ptr.hbm [resolvable:$true] %s38_s11 }
   0x4   :  { %19 = vsyncpa [#allocation16], 0  ;;  %s2854_s12 = smov [#allocation8]   ;;  %s61_s16 = sshll.u32 %s3396_s3, 4  ;;  %s62_s16 = int_to_ptr.hbm [resolvable:$true] %s61_s16 }
   0x5   :  { %s40_s13 = sshll.u32 %s2854_s12, 4  ;;  %s2855_s17 = smov [#allocation11]   ;;  %s41_s13 = int_to_ptr.vmem [resolvable:$true] %s40_s13 }
   0x6   :  { %43 = dma.hbm_to_vmem [thread:$0]  %s39_s11, 32, %s41_s13, [#allocation9]  }
   0x7   :  { %s63_s18 = sshll.u32 %s2855_s17, 4  ;;  %s24_s21 = sshll.u32 %s3393_s0, 4  ;;  %s64_s18 = int_to_ptr.vmem [resolvable:$true] %s63_s18  ;;  %s25_s21 = int_to_ptr.hbm [resolvable:$true] %s24_s21 }
   0x8   :  { %s2856_s1 = smov 128   ;;  %s2857_s22 = smov 8  }
   0x9   :  { %69 = dma.hbm_to_vmem [thread:$0]  %s62_s16, 512, %s64_s18, [#allocation12], %s2856_s1, %s2856_s1, %s2857_s22  }
   0xa   :  { %s48_s25 = sshll.u32 %s3395_s2, 4  ;;  %s2858_s3 = smov [#allocation5]   ;;  %s49_s25 = int_to_ptr.hbm [resolvable:$true] %s48_s25 }
   0xb   :  { %s26_s26 = sshll.u32 %s2858_s3, 4  ;;  %s2859_s0 = smov [#allocation10]   ;;  %s27_s26 = int_to_ptr.vmem [resolvable:$true] %s26_s26 }
   0xc   :  { %32 = dma.hbm_to_vmem [thread:$0]  %s25_s21, 256, %s27_s26, [#allocation6], %s2856_s1, %s2856_s1, %s2857_s22  }
   0xd   :  { %s50_s27 = sshll.u32 %s2859_s0, 4  ;;  %s78_s30 = sshll.u32 %s3399_s6, 4  ;;  %s51_s27 = int_to_ptr.vmem [resolvable:$true] %s50_s27  ;;  %s79_s30 = int_to_ptr.hbm [resolvable:$true] %s78_s30 }
   0xe   :  { %56 = dma.hbm_to_vmem [thread:$0]  %s49_s25, 512, %s51_s27, [#allocation9], %s2856_s1, %s2856_s1, %s2857_s22  }
   0xf   :  { %s2860_s2 = smov [#allocation13]  }
  0x10   :  { %s80_s10 = sshll.u32 %s2860_s2, 4  ;;  %s81_s10 = int_to_ptr.vmem [resolvable:$true] %s80_s10 }
  0x11   :  { %86 = dma.hbm_to_vmem [thread:$0]  %s79_s30, 512, %s81_s10, [#allocation12], %s2856_s1, %s2856_s1, %s2857_s22  }
  0x12   :  { %2844 = dma.done.wait [#allocation6], 256  }
  0x13   :  { %2845 = vsyncadd [#allocation6], 4294967040 }
  0x14   :  { %2846 = dma.done.wait [#allocation9], 544  }
  0x15   :  { %2847 = vsyncadd [#allocation9], 4294966752 }
  0x16   :  { %2848 = dma.done.wait [#allocation12], 1024  }
  0x17   :  { %2849 = vsyncadd [#allocation12], 4294966272  ;;  %vm119_vm0 = vcmask 261120   ;;  %v114_v0 = vld [vmem:[#allocation10 + $0x18] sm:$0xff]  ;;  %v113_v1 = vld [vmem:[#allocation10 + $0x10] sm:$0xff]  ;;  %vm366_vm1 = vcmask 254976  }
  0x18   :  { %v112_v2 = vld [vmem:[#allocation10 + $0x8] sm:$0xff]  ;;  %v2943_v3 = vand.u32 4294901760, %v114_v0  ;;  %v2945_v4 = vand.u32 4294901760, %v113_v1  ;;  %v111_v6 = vld [vmem:[#allocation10] sm:$0xff]  ;;  %v110_v7 = vld [vmem:[#allocation5 + $0x8] sm:$0xff]  ;;  %vm356_vm2 = vcmask 779264  }
  0x19   :  { %v2947_v5 = vand.u32 4294901760, %v112_v2  ;;  %v109_v8 = vld [vmem:[#allocation5] sm:$0xff]  ;;  %v2949_v9 = vand.u32 4294901760, %v111_v6  ;;  %v124_v10 = vsel %vm119_vm0, %v110_v7, 0  ;;  %v371_v16 = vld [vmem:[#allocation11 + $0x18] sm:$0xff]  ;;  %v368_v40 = vld [vmem:[#allocation11] sm:$0xff] }
  0x1a   :  { %v121_v11 = vsel %vm119_vm0, %v109_v8, 0  ;;  %2604 = vmatpush.msra.mxu2 %v2943_v3  ;;  %v176_v12 = vsub.f32 %v114_v0, %v2943_v3  ;;  %v2955_v13 = vand.u32 4294901760, %v124_v10  ;;  %v182_v14 = vsub.f32 %v113_v1, %v2945_v4  ;;  %139 = vmatpush.msra.mxu0 %v2943_v3  ;;  %v365_v17 = vld [vmem:[#allocation8] sm:$0x3]  ;;  %v370_v24 = vld [vmem:[#allocation11 + $0x10] sm:$0xff]  ;;  %v369_v34 = vld [vmem:[#allocation11 + $0x8] sm:$0xff] }
  0x1b   :  { %v2959_v15 = vsub.f32 %v112_v2, %v2947_v5  ;;  %v2963_v18 = vsub.f32 %v111_v6, %v2949_v9  ;;  %v2965_v19 = vand.u32 4294901760, %v121_v11  ;;  %367 = vst.msk [vmem:[#allocation2] sm:$0x3] %vm366_vm1, %v365_v17  ;;  %v2978_v27 = vand.u32 4294901760, %v371_v16  ;;  %v2624_v7 = vld [vmem:[%s3397_s4] ss:$0 sm:$0xff] }
  0x1c   :  { %2605 = vmatpush.msra.mxu2 %v2945_v4  ;;  %v177_v20 = vand.u32 4294901760, %v176_v12  ;;  %v2970_v21 = vsub.f32 %v124_v10, %v2955_v13  ;;  %v183_v22 = vand.u32 4294901760, %v182_v14  ;;  %141 = vmatpush.msra.mxu0 %v2945_v4  ;;  %v2987_v33 = vand.u32 4294901760, %v370_v24  ;;  %s2861_s13 = smov 64   ;;  %s2862_s14 = smov 96  }
  0x1d   :  { %v189_v23 = vand.u32 4294901760, %v2959_v15  ;;  %v195_v25 = vand.u32 4294901760, %v2963_v18  ;;  %v2976_v26 = vsub.f32 %v121_v11, %v2965_v19  ;;  %v3001_v43 = vsub.f32 %v371_v16, %v2978_v27  ;;  %s2863_s15 = smov 32   ;;  %s2579_s21 = sshll.u32 %s3402_s9, 4  ;;  %s2580_s21 = int_to_ptr.hbm [resolvable:$true] %s2579_s21 }
  0x1e   :  { %2606 = vmatpush.msra.mxu2 %v2947_v5  ;;  %v178_v28 = vsub.f32 %v176_v12, %v177_v20  ;;  %v156_v29 = vand.u32 4294901760, %v2970_v21  ;;  %v184_v30 = vsub.f32 %v182_v14, %v183_v22  ;;  %143 = vmatpush.msra.mxu0 %v2947_v5  ;;  %v3003_v44 = vand.u32 4294901760, %v369_v34  ;;  %s2565_s26 = sshll.u32 %s3401_s8, 4  ;;  %s2566_s26 = int_to_ptr.hbm [resolvable:$true] %s2565_s26 }
  0x1f   :  { %v190_v31 = vsub.f32 %v2959_v15, %v189_v23  ;;  %v148_v32 = vand.u32 4294901760, %v2976_v26  ;;  %v196_v38 = vsub.f32 %v2963_v18, %v195_v25  ;;  %v3008_v48 = vsub.f32 %v370_v24, %v2987_v33 }
  0x20   :  { %2607 = vmatpush.msra.mxu2 %v2949_v9  ;;  %v179_v35 = vand.u32 4294901760, %v178_v28  ;;  %v157_v36 = vsub.f32 %v2970_v21, %v156_v29  ;;  %v185_v37 = vand.u32 4294901760, %v184_v30  ;;  %145 = vmatpush.msra.mxu0 %v2949_v9  ;;  %v3010_v49 = vand.u32 4294901760, %v368_v40 }
  0x21   :  { %v149_v39 = vsub.f32 %v2976_v26, %v148_v32  ;;  %v191_v42 = vand.u32 4294901760, %v190_v31  ;;  %v197_v47 = vand.u32 4294901760, %v196_v38  ;;  %v3016_v51 = vand.u32 4294901760, %v3001_v43 }
  0x22   :  { %222 = vmatpush.msrb.mxu2 %v176_v12  ;;  %291 = vmatpush.msrb.mxu0 %v177_v20  ;;  %v158_v41 = vand.u32 4294901760, %v157_v36  ;;  %v3005_v45 = vld [vmem:[#allocation2] sm:$0x3]  ;;  %v3019_v52 = vsub.f32 %v369_v34, %v3003_v44  ;;  %v3024_v53 = vand.u32 4294901760, %v3008_v48  ;;  %v3029_v55 = vsub.f32 %v368_v40, %v3010_v49 }
  0x23   :  { %2608 = vmatpush.msra.mxu3 %v179_v35  ;;  %180 = vmatpush.msra.mxu1 %v179_v35  ;;  %v150_v46 = vand.u32 4294901760, %v149_v39  ;;  %v379_v50 = vsel %vm119_vm0, %v3005_v45, 0  ;;  %v425_v56 = vsub.f32 %v3001_v43, %v3016_v51  ;;  %v3151_v35 = vld [vmem:[%s3398_s5] ss:$0 sm:$0xff] }
  0x24   :  { %225 = vmatpush.msrb.mxu2 %v182_v14  ;;  %295 = vmatpush.msrb.mxu0 %v183_v22  ;;  %v3026_v54 = vand.u32 4294901760, %v379_v50  ;;  %v3037_v57 = vand.u32 4294901760, %v3019_v52  ;;  %v431_v58 = vsub.f32 %v3008_v48, %v3024_v53  ;;  %v3049_v60 = vand.u32 4294901760, %v3029_v55 }
  0x25   :  { %159 = vmatmul.f32.vlgmr.msra.gmra.mxu2 %v158_v41  ;;  %2609 = vmatpush.msra.mxu3 %v185_v37  ;;  %v3055_v61 = vand.u32 4294901760, %v425_v56 }
  0x26   :  { %228 = vmatpush.msrb.mxu2 %v2959_v15  ;;  %186 = vmatpush.msra.mxu1 %v185_v37  ;;  %v3046_v59 = vsub.f32 %v379_v50, %v3026_v54  ;;  %v437_v62 = vsub.f32 %v3019_v52, %v3037_v57  ;;  %v3064_v63 = vand.u32 4294901760, %v431_v58  ;;  %v443_v1 = vsub.f32 %v3029_v55, %v3049_v60 }
  0x27   :  { %2610 = vmatpush.msra.mxu3 %v191_v42  ;;  %151 = vmatmul.f32.vlgmr.msra.gmra.mxu0 %v150_v46 }
  0x28   :  { %231 = vmatpush.msrb.mxu2 %v2963_v18  ;;  %192 = vmatpush.msra.mxu1 %v191_v42  ;;  %v403_v0 = vand.u32 4294901760, %v3046_v59  ;;  %v3074_v2 = vand.u32 4294901760, %v437_v62 }
  0x29   :  { %2611 = vmatpush.msra.mxu3 %v197_v47  ;;  %299 = vmatpush.msrb.mxu0 %v189_v23 }
  0x2a   :  { %394 = vmatpush.msra.mxu2 %v2978_v27  ;;  %204 = vmatmul.f32.vlgmr.msra.gmra.mxu3 %v2955_v13 }
  0x2b   :  { %198 = vmatpush.msra.mxu1 %v197_v47  ;;  %256 = vmatpush.msrb.mxu3 %v2943_v3 }
  0x2c   :  { %200 = vmatmul.f32.vlgmr.msra.gmra.mxu1 %v2965_v19  ;;  %396 = vmatpush.msra.mxu2 %v2987_v33 }
  0x2d   :  { %326 = vmatpush.msrb.mxu1 %v2943_v3  ;;  %234 = vmatmul.f32.vlgmr.msrb.gmra.mxu2 %v2976_v26  ;;  %v404_v3 = vsub.f32 %v3046_v59, %v403_v0 }
  0x2e   :  { %258 = vmatpush.msrb.mxu3 %v2945_v4  ;;  %398 = vmatpush.msra.mxu2 %v3003_v44 }
  0x2f   :  { %328 = vmatpush.msrb.mxu1 %v2945_v4  ;;  %303 = vmatpush.msrb.mxu0 %v195_v25  ;;  %v3082_v4 = vand.u32 4294901760, %v443_v1 }
  0x30   :  { %260 = vmatpush.msrb.mxu3 %v2947_v5  ;;  %305 = vmatmul.f32.vlgmr.msrb.gmra.mxu0 %v2965_v19 }
  0x31   :  { %330 = vmatpush.msrb.mxu1 %v2947_v5  ;;  %400 = vmatpush.msra.mxu2 %v3010_v49  ;;  %v405_v5 = vand.u32 4294901760, %v404_v3 }
  0x32   :  { %262 = vmatpush.msrb.mxu3 %v2949_v9  ;;  %523 = vmatpush.msra.mxu0 %v3016_v51 }
  0x33   :  { %266 = vmatmul.f32.vlgmr.msrb.gmra.mxu3 %v148_v32  ;;  %332 = vmatpush.msrb.mxu1 %v2949_v9 }
  0x34   :  { %427 = vmatpush.msra.mxu3 %v3055_v61  ;;  %334 = vmatmul.f32.vlgmr.msrb.gmra.mxu1 %v2965_v19 }
  0x35   :  { %465 = vmatpush.msrb.mxu2 %v3001_v43  ;;  %554 = vmatpush.msra.mxu1 %v2978_v27 }
  0x36   :  { %239 = vmatmul.f32.gmra.mxu2 %v2970_v21  ;;  %433 = vmatpush.msra.mxu3 %v3064_v63 }
  0x37   :  { %468 = vmatpush.msrb.mxu2 %v3008_v48  ;;  %527 = vmatpush.msra.mxu0 %v3024_v53 }
  0x38   :  { %439 = vmatpush.msra.mxu3 %v3074_v2  ;;  %309 = vmatmul.f32.gmra.mxu0 %v2955_v13 }
  0x39   :  { %471 = vmatpush.msrb.mxu2 %v3019_v52  ;;  %556 = vmatpush.msra.mxu1 %v2987_v33 }
  0x3a   :  { %445 = vmatpush.msra.mxu3 %v3082_v4  ;;  %531 = vmatpush.msra.mxu0 %v3037_v57 }
  0x3b   :  { %272 = vmatmul.f32.gmra.mxu3 %v156_v29  ;;  %474 = vmatpush.msrb.mxu2 %v3029_v55 }
  0x3c   :  { %494 = vmatpush.msrb.mxu3 %v2978_v27  ;;  %338 = vmatmul.f32.gmra.mxu1 %v2955_v13 }
  0x3d   :  { %558 = vmatpush.msra.mxu1 %v3003_v44  ;;  %535 = vmatpush.msra.mxu0 %v3049_v60 }
  0x3e   :  { %406 = vmatmul.f32.vlgmr.msra.gmra.mxu2 %v405_v5  ;;  %496 = vmatpush.msrb.mxu3 %v2987_v33 }
  0x3f   :  { %704 = vmatpush.msrb.mxu0 %v3001_v43  ;;  %560 = vmatpush.msra.mxu1 %v3010_v49 }
  0x40   :  { %498 = vmatpush.msrb.mxu3 %v3003_v44  ;;  %633 = vmatpush.msra.mxu2 %v2978_v27 }
  0x41   :  { %537 = vmatmul.f32.vlgmr.msra.gmra.mxu0 %v3026_v54  ;;  %733 = vmatpush.msrb.mxu1 %v2978_v27 }
  0x42   :  { %500 = vmatpush.msrb.mxu3 %v3010_v49  ;;  %707 = vmatpush.msrb.mxu0 %v3008_v48 }
  0x43   :  { %447 = vmatmul.f32.vlgmr.msra.gmra.mxu3 %v3026_v54  ;;  %735 = vmatpush.msrb.mxu1 %v2987_v33 }
  0x44   :  { %666 = vmatpush.msra.mxu3 %v3055_v61  ;;  %562 = vmatmul.f32.vlgmr.msra.gmra.mxu1 %v3026_v54 }
  0x45   :  { %710 = vmatpush.msrb.mxu0 %v3019_v52  ;;  %635 = vmatpush.msra.mxu2 %v2987_v33 }
  0x46   :  { %477 = vmatmul.f32.vlgmr.msrb.gmra.mxu2 %v3046_v59  ;;  %672 = vmatpush.msra.mxu3 %v3064_v63 }
  0x47   :  { %713 = vmatpush.msrb.mxu0 %v3029_v55  ;;  %737 = vmatpush.msrb.mxu1 %v3003_v44 }
  0x48   :  { %678 = vmatpush.msra.mxu3 %v3074_v2  ;;  %637 = vmatpush.msra.mxu2 %v3003_v44 }
  0x49   :  { %873 = vmatpush.msra.mxu0 %v2978_v27  ;;  %739 = vmatpush.msrb.mxu1 %v3010_v49 }
  0x4a   :  { %684 = vmatpush.msra.mxu3 %v3082_v4  ;;  %639 = vmatpush.msra.mxu2 %v3010_v49 }
  0x4b   :  { %504 = vmatmul.f32.vlgmr.msrb.gmra.mxu3 %v403_v0  ;;  %906 = vmatpush.msra.mxu1 %v3055_v61 }
  0x4c   :  { %793 = vmatpush.msrb.mxu3 %v2978_v27  ;;  %762 = vmatpush.msrb.mxu2 %v3016_v51 }
  0x4d   :  { %875 = vmatpush.msra.mxu0 %v2987_v33  ;;  %912 = vmatpush.msra.mxu1 %v3064_v63 }
  0x4e   :  { %795 = vmatpush.msrb.mxu3 %v2987_v33  ;;  %766 = vmatpush.msrb.mxu2 %v3024_v53 }
  0x4f   :  { %877 = vmatpush.msra.mxu0 %v3003_v44  ;;  %918 = vmatpush.msra.mxu1 %v3074_v2 }
  0x50   :  { %797 = vmatpush.msrb.mxu3 %v3003_v44  ;;  %770 = vmatpush.msrb.mxu2 %v3037_v57 }
  0x51   :  { %879 = vmatpush.msra.mxu0 %v3010_v49  ;;  %924 = vmatpush.msra.mxu1 %v3082_v4 }
  0x52   :  { %799 = vmatpush.msrb.mxu3 %v3010_v49  ;;  %774 = vmatpush.msrb.mxu2 %v3049_v60 }
  0xa4   :  { %v152_v6 = vpop.f32.mrf.mxu0 }
  0xa5   :  { %v153_v9 = vadd.f32 %v2624_v7, %v152_v6 }
  0xa8   :  { %v160_v8 = vpop.f32.mrf.mxu2 }
  0xa9   :  { %v201_v10 = vpop.f32.mrf.mxu1  ;;  %v161_v18 = vadd.f32 %v2624_v7, %v160_v8 }
  0xaa   :  { %v202_v12 = vadd.f32 %v201_v10, %v153_v9 }
  0xad   :  { %v205_v11 = vpop.f32.mrf.mxu3  ;;  %v306_v15 = vpop.f32.mrf.mxu0 }
  0xae   :  { %v206_v22 = vadd.f32 %v205_v11, %v161_v18 }
  0xb0   :  { %v235_v13 = vpop.f32.mrf.mxu2 }
  0xb1   :  { %v236_v14 = vadd.f32 %v235_v13, %v202_v12  ;;  %v335_v17 = vpop.f32.mrf.mxu1 }
  0xb5   :  { %v310_v30 = vpop.f32.mrf.mxu0 }
  0xb6   :  { %v267_v16 = vpop.f32.mrf.mxu3 }
  0xb7   :  { %v268_v19 = vadd.f32 %v267_v16, %v236_v14 }
  0xb9   :  { %v240_v20 = vpop.f32.mrf.mxu2  ;;  %v307_v21 = vadd.f32 %v306_v15, %v268_v19  ;;  %v339_v32 = vpop.f32.mrf.mxu1 }
  0xba   :  { %v241_v24 = vadd.f32 %v240_v20, %v206_v22 }
  0xbb   :  { %v336_v23 = vadd.f32 %v335_v17, %v307_v21 }
  0xbd   :  { %v344_v25 = vrot.slane %v336_v23, 2  ;;  %v345_v26 = vrot.slane %v336_v23, 4  ;;  %v346_v28 = vrot.slane %v336_v23, 6  ;;  %357 = vst.msk [vmem:[#allocation3] sm:$0x3] %vm356_vm2, %v336_v23 }
  0xbe   :  { %v273_v29 = vpop.f32.mrf.mxu3  ;;  %v538_v56 = vpop.f32.mrf.mxu0 }
  0xbf   :  { %358 = vst.msk [vmem:[#allocation3 + $0x2] sm:$0x3] %vm356_vm2, %v344_v25  ;;  %v274_v31 = vadd.f32 %v273_v29, %v241_v24 }
  0xc0   :  { %359 = vst.msk [vmem:[#allocation3 + $0x4] sm:$0x3] %vm356_vm2, %v345_v26 }
  0xc1   :  { %360 = vst.msk [vmem:[#allocation3 + $0x6] sm:$0x3] %vm356_vm2, %v346_v28  ;;  %v311_v34 = vadd.f32 %v310_v30, %v274_v31  ;;  %v407_v36 = vpop.f32.mrf.mxu2  ;;  %v563_v59 = vpop.f32.mrf.mxu1 }
  0xc2   :  { %v408_v38 = vadd.f32 %v3151_v35, %v407_v36 }
  0xc3   :  { %v340_v37 = vadd.f32 %v339_v32, %v311_v34 }
  0xc4   :  { %v374_v1 = vld [vmem:[#allocation3] sm:$0x3] }
  0xc5   :  { %v347_v39 = vrot.slane %v340_v37, 2  ;;  %v348_v40 = vrot.slane %v340_v37, 4  ;;  %v349_v41 = vrot.slane %v340_v37, 6  ;;  %361 = vst.msk [vmem:[#allocation3 + $0x8] sm:$0x3] %vm356_vm2, %v340_v37 }
  0xc6   :  { %v448_v42 = vpop.f32.mrf.mxu3 }
  0xc7   :  { %362 = vst.msk [vmem:[#allocation3 + $0xa] sm:$0x3] %vm356_vm2, %v347_v39  ;;  %v449_v46 = vadd.f32 %v448_v42, %v408_v38 }
  0xc8   :  { %363 = vst.msk [vmem:[#allocation3 + $0xc] sm:$0x3] %vm356_vm2, %v348_v40 }
  0xc9   :  { %364 = vst.msk [vmem:[#allocation3 + $0xe] sm:$0x3] %vm356_vm2, %v349_v41  ;;  %v478_v47 = vpop.f32.mrf.mxu2 }
  0xca   :  { %v479_v50 = vadd.f32 %v478_v47, %v449_v46 }
  0xce   :  { %v505_v54 = vpop.f32.mrf.mxu3 }
  0xcf   :  { %v506_v58 = vadd.f32 %v505_v54, %v479_v50 }
  0xd1   :  { %v539_v62 = vadd.f32 %v538_v56, %v506_v58 }
  0xd3   :  { %v564_v0 = vadd.f32 %v563_v59, %v539_v62 }
  0xd5   :  { %587 = vrot.lane.b32.xlu0 %v564_v0, %s2861_s13  ;;  %v566_v3 = vadd.f32 %v564_v0, %v374_v1 }
  0xd7   :  { %v2596_v5 = vmul.f32 -1.442695, %v566_v3 }
  0xd9   :  { %2627 = vpow2.f32 %v2596_v5 }
  0xdf   :  { %v2628_v6 = vpop.eup %2627 }
  0xe0   :  { %v570_v7 = vadd.f32 1.0, %v2628_v6 }
  0xe2   :  { %2629 = vrcp.f32 %v570_v7  ;;  %v582_v13 = vand.u32 2147483648, %v570_v7  ;;  %vm576_vm4 = vweird.f32 %v570_v7  ;;  %v580_v14 = vand.u32 2147483647, %v570_v7 }
  0xe4   :  { %v583_v16 = vor.u32 1.1754944e-38, %v582_v13  ;;  %vm581_vm6 = vcmp.eq.f32.partialorder %v580_v14, 8.507059e+37 }
  0xe8   :  { %v2630_v8 = vpop.eup %2629 }
  0xe9   :  { %v572_v9 = vmul.f32 %v2630_v8, %v570_v7  ;;  %vm577_vm3 = vweird.f32 %v2630_v8 }
  0xea   :  { %vm578_vm5 = vmor %vm576_vm4, %vm577_vm3 }
  0xeb   :  { %v573_v10 = vsub.f32 1.0, %v572_v9 }
  0xed   :  { %v574_v11 = vmul.f32 %v2630_v8, %v573_v10 }
  0xef   :  { %v575_v12 = vadd.f32 %v2630_v8, %v574_v11 }
  0xf1   :  { %v579_v15 = vsel %vm578_vm5, %v2630_v8, %v575_v12 }
  0xf2   :  { %v584_v18 = vsel %vm581_vm6, %v583_v16, %v579_v15 }
  0xf3   :  { %v597_v24 = vsub.f32 1.0, %v584_v18 }
 0x147   :  { %v588_v17 = vpop.permute.xlu0 %587 }
 0x148   :  { %v590_v19 = vmul.f32 %v588_v17, %v584_v18 }
 0x14a   :  { %592 = vrot.lane.b32.xlu0 %v590_v19, %s2861_s13 }
 0x1bc   :  { %v593_v20 = vpop.permute.xlu0 %592 }
 0x1bd   :  { %v595_v21 = vadd.f32 %v593_v20, %v374_v1  ;;  %v616_v1 = vld [vmem:[#allocation3 + $0x2] sm:$0x3] }
 0x1bf   :  { %2631 = vtanh.f32 %v595_v21 }
 0x1c5   :  { %v2632_v22 = vpop.eup %2631 }
 0x1c6   :  { %599 = vrot.lane.b32.xlu1 %v2632_v22, %s2862_s14 }
 0x1ce   :  { %603 = vrot.lane.b32.xlu1 %v3005_v45, %s2863_s15 }
 0x238   :  { %v600_v23 = vpop.permute.xlu1 %599 }
 0x239   :  { %v602_v26 = vmul.f32 %v600_v23, %v597_v24 }
 0x240   :  { %v604_v25 = vpop.permute.xlu1 %603 }
 0x241   :  { %v606_v28 = vmul.f32 %v604_v25, %v584_v18 }
 0x243   :  { %v607_v29 = vadd.f32 %v606_v28, %v602_v26 }
 0x245   :  { %609 = vrot.lane.b32.xlu2 %v607_v29, %s2862_s14 }
 0x29f   :  { %v610_v30 = vpop.permute.xlu2 %609 }
 0x2a0   :  { %612 = vst.msk [vmem:[#allocation2] sm:$0x3] %vm366_vm1, %v610_v30 }
 0x2a1   :  { %613 = vst.msk [vmem:[#allocation4] sm:$0x3] %vm366_vm1, %v610_v30 }
 0x2a7   :  { %v614_v31 = vld [vmem:[#allocation2] sm:$0x3] }
 0x2a8   :  { %v2294_v32 = vld [vmem:[#allocation4] sm:$0x3]  ;;  %v618_v34 = vsel %vm119_vm0, %v614_v31, 0 }
 0x2a9   :  { %2318 = vst [vmem:[#allocation1] ss:$4 sm:$0xff] %v2294_v32  ;;  %v640_v36 = vand.u32 4294901760, %v618_v34 }
 0x2ab   :  { %686 = vmatmul.f32.vlgmr.msra.gmra.mxu3 %v640_v36  ;;  %v641_v45 = vsub.f32 %v618_v34, %v640_v36 }
 0x2ac   :  { %973 = vmatpush.msra.mxu3 %v2978_v27 }
 0x2ad   :  { %716 = vmatmul.f32.vlgmr.msrb.gmra.mxu0 %v641_v45  ;;  %v642_v37 = vand.u32 4294901760, %v641_v45 }
 0x2ae   :  { %975 = vmatpush.msra.mxu3 %v2987_v33  ;;  %1002 = vmatpush.msrb.mxu0 %v3016_v51 }
 0x2af   :  { %743 = vmatmul.f32.vlgmr.msrb.gmra.mxu1 %v642_v37  ;;  %v643_v38 = vsub.f32 %v641_v45, %v642_v37 }
 0x2b0   :  { %977 = vmatpush.msra.mxu3 %v3003_v44  ;;  %1033 = vmatpush.msrb.mxu1 %v2978_v27 }
 0x2b1   :  { %v644_v39 = vand.u32 4294901760, %v643_v38  ;;  %1006 = vmatpush.msrb.mxu0 %v3024_v53 }
 0x2b2   :  { %979 = vmatpush.msra.mxu3 %v3010_v49  ;;  %1035 = vmatpush.msrb.mxu1 %v2987_v33 }
 0x2b3   :  { %645 = vmatmul.f32.vlgmr.msra.gmra.mxu2 %v644_v39  ;;  %801 = vmatmul.f32.vlgmr.msrb.gmra.mxu3 %v640_v36 }
 0x2b4   :  { %944 = vmatpush.msra.mxu2 %v3001_v43  ;;  %1037 = vmatpush.msrb.mxu1 %v3003_v44 }
 0x2b5   :  { %1010 = vmatpush.msrb.mxu0 %v3037_v57  ;;  %1146 = vmatpush.msrb.mxu3 %v3055_v61 }
 0x2b6   :  { %947 = vmatpush.msra.mxu2 %v3008_v48  ;;  %1039 = vmatpush.msrb.mxu1 %v3010_v49 }
 0x2b7   :  { %1014 = vmatpush.msrb.mxu0 %v3049_v60  ;;  %1152 = vmatpush.msrb.mxu3 %v3064_v63 }
 0x2b8   :  { %950 = vmatpush.msra.mxu2 %v3019_v52 }
 0x2b9   :  { %1158 = vmatpush.msrb.mxu3 %v3074_v2 }
 0x2ba   :  { %953 = vmatpush.msra.mxu2 %v3029_v55 }
 0x2bb   :  { %776 = vmatmul.f32.vlgmr.msrb.gmra.mxu2 %v640_v36  ;;  %1164 = vmatpush.msrb.mxu3 %v3082_v4 }
 0x2bc   :  { %1113 = vmatpush.msrb.mxu2 %v2978_v27 }
 0x2be   :  { %1115 = vmatpush.msrb.mxu2 %v2987_v33 }
 0x2c0   :  { %1117 = vmatpush.msrb.mxu2 %v3003_v44 }
 0x2c2   :  { %1119 = vmatpush.msrb.mxu2 %v3010_v49 }
 0x32a   :  { %v717_v47 = vpop.f32.mrf.mxu0 }
 0x32c   :  { %v744_v54 = vpop.f32.mrf.mxu1 }
 0x32e   :  { %v687_v40 = vpop.f32.mrf.mxu3 }
 0x336   :  { %v646_v41 = vpop.f32.mrf.mxu2  ;;  %v802_v62 = vpop.f32.mrf.mxu3 }
 0x337   :  { %v647_v42 = vadd.f32 %v3151_v35, %v646_v41 }
 0x339   :  { %v688_v46 = vadd.f32 %v687_v40, %v647_v42 }
 0x33b   :  { %v718_v50 = vadd.f32 %v717_v47, %v688_v46 }
 0x33d   :  { %v745_v56 = vadd.f32 %v744_v54, %v718_v50 }
 0x33e   :  { %v777_v58 = vpop.f32.mrf.mxu2 }
 0x33f   :  { %v778_v59 = vadd.f32 %v777_v58, %v745_v56 }
 0x341   :  { %v803_v0 = vadd.f32 %v802_v62, %v778_v59 }
 0x343   :  { %826 = vrot.lane.b32.xlu2 %v803_v0, %s2861_s13  ;;  %v805_v3 = vadd.f32 %v803_v0, %v616_v1 }
 0x345   :  { %v2597_v5 = vmul.f32 -1.442695, %v805_v3 }
 0x347   :  { %2633 = vpow2.f32 %v2597_v5 }
 0x34b   :  { %842 = vrot.lane.b32.xlu2 %v614_v31, %s2863_s15 }
 0x34d   :  { %v2634_v6 = vpop.eup %2633 }
 0x34e   :  { %v809_v7 = vadd.f32 1.0, %v2634_v6 }
 0x350   :  { %2635 = vrcp.f32 %v809_v7  ;;  %v821_v13 = vand.u32 2147483648, %v809_v7  ;;  %vm815_vm8 = vweird.f32 %v809_v7  ;;  %v819_v14 = vand.u32 2147483647, %v809_v7 }
 0x352   :  { %v822_v16 = vor.u32 1.1754944e-38, %v821_v13  ;;  %vm820_vm10 = vcmp.eq.f32.partialorder %v819_v14, 8.507059e+37 }
 0x356   :  { %v2636_v8 = vpop.eup %2635 }
 0x357   :  { %v811_v9 = vmul.f32 %v2636_v8, %v809_v7  ;;  %vm816_vm7 = vweird.f32 %v2636_v8 }
 0x358   :  { %vm817_vm9 = vmor %vm815_vm8, %vm816_vm7 }
 0x359   :  { %v812_v10 = vsub.f32 1.0, %v811_v9 }
 0x35b   :  { %v813_v11 = vmul.f32 %v2636_v8, %v812_v10 }
 0x35d   :  { %v814_v12 = vadd.f32 %v2636_v8, %v813_v11 }
 0x35f   :  { %v818_v15 = vsel %vm817_vm9, %v2636_v8, %v814_v12 }
 0x360   :  { %v823_v18 = vsel %vm820_vm10, %v822_v16, %v818_v15 }
 0x361   :  { %v836_v24 = vsub.f32 1.0, %v823_v18 }
 0x39d   :  { %v827_v17 = vpop.permute.xlu2 %826 }
 0x39e   :  { %v829_v19 = vmul.f32 %v827_v17, %v823_v18 }
 0x3a0   :  { %831 = vrot.lane.b32.xlu0 %v829_v19, %s2861_s13 }
 0x3a5   :  { %v843_v23 = vpop.permute.xlu2 %842 }
 0x3a6   :  { %v845_v26 = vmul.f32 %v843_v23, %v823_v18 }
 0x412   :  { %v832_v20 = vpop.permute.xlu0 %831 }
 0x413   :  { %v834_v21 = vadd.f32 %v832_v20, %v616_v1  ;;  %v856_v1 = vld [vmem:[#allocation3 + $0x4] sm:$0x3] }
 0x415   :  { %2637 = vtanh.f32 %v834_v21 }
 0x41b   :  { %v2638_v22 = vpop.eup %2637 }
 0x41c   :  { %838 = vrot.lane.b32.xlu1 %v2638_v22, %s2862_s14 }
 0x48e   :  { %v839_v25 = vpop.permute.xlu1 %838 }
 0x48f   :  { %v841_v28 = vmul.f32 %v839_v25, %v836_v24 }
 0x491   :  { %v846_v29 = vadd.f32 %v845_v26, %v841_v28 }
 0x493   :  { %848 = vrot.lane.b32.xlu0 %v846_v29, %s2862_s14 }
 0x505   :  { %v849_v30 = vpop.permute.xlu0 %848 }
 0x506   :  { %851 = vst.msk [vmem:[#allocation2] sm:$0x3] %vm366_vm1, %v849_v30 }
 0x507   :  { %853 = vst.msk [vmem:[#allocation4 + $0x2] sm:$0x3] %vm366_vm1, %v849_v30 }
 0x50d   :  { %v854_v31 = vld [vmem:[#allocation2] sm:$0x3] }
 0x50e   :  { %v2295_v32 = vld [vmem:[#allocation4 + $0x2] sm:$0x3]  ;;  %v858_v34 = vsel %vm119_vm0, %v854_v31, 0 }
 0x50f   :  { %2320 = vst [vmem:[#allocation1 + $0x1] ss:$4 sm:$0xff] %v2295_v32  ;;  %v880_v36 = vand.u32 4294901760, %v858_v34 }
 0x511   :  { %926 = vmatmul.f32.vlgmr.msra.gmra.mxu1 %v880_v36  ;;  %v881_v45 = vsub.f32 %v858_v34, %v880_v36 }
 0x512   :  { %1213 = vmatpush.msra.mxu1 %v2978_v27 }
 0x513   :  { %956 = vmatmul.f32.vlgmr.msra.gmra.mxu2 %v881_v45  ;;  %v882_v37 = vand.u32 4294901760, %v881_v45 }
 0x514   :  { %1215 = vmatpush.msra.mxu1 %v2987_v33  ;;  %1242 = vmatpush.msra.mxu2 %v3016_v51 }
 0x515   :  { %983 = vmatmul.f32.vlgmr.msra.gmra.mxu3 %v882_v37  ;;  %v883_v38 = vsub.f32 %v881_v45, %v882_v37 }
 0x516   :  { %1217 = vmatpush.msra.mxu1 %v3003_v44  ;;  %1273 = vmatpush.msra.mxu3 %v2978_v27 }
 0x517   :  { %v884_v39 = vand.u32 4294901760, %v883_v38  ;;  %1246 = vmatpush.msra.mxu2 %v3024_v53 }
 0x518   :  { %1219 = vmatpush.msra.mxu1 %v3010_v49  ;;  %1275 = vmatpush.msra.mxu3 %v2987_v33 }
 0x519   :  { %885 = vmatmul.f32.vlgmr.msra.gmra.mxu0 %v884_v39  ;;  %1041 = vmatmul.f32.vlgmr.msrb.gmra.mxu1 %v880_v36 }
 0x51a   :  { %1184 = vmatpush.msra.mxu0 %v3001_v43  ;;  %1277 = vmatpush.msra.mxu3 %v3003_v44 }
 0x51b   :  { %1250 = vmatpush.msra.mxu2 %v3037_v57  ;;  %1386 = vmatpush.msrb.mxu1 %v3055_v61 }
 0x51c   :  { %1187 = vmatpush.msra.mxu0 %v3008_v48  ;;  %1279 = vmatpush.msra.mxu3 %v3010_v49 }
 0x51d   :  { %1254 = vmatpush.msra.mxu2 %v3049_v60  ;;  %1392 = vmatpush.msrb.mxu1 %v3064_v63 }
 0x51e   :  { %1190 = vmatpush.msra.mxu0 %v3019_v52 }
 0x51f   :  { %1398 = vmatpush.msrb.mxu1 %v3074_v2 }
 0x520   :  { %1193 = vmatpush.msra.mxu0 %v3029_v55 }
 0x521   :  { %1016 = vmatmul.f32.vlgmr.msrb.gmra.mxu0 %v880_v36  ;;  %1404 = vmatpush.msrb.mxu1 %v3082_v4 }
 0x522   :  { %1353 = vmatpush.msrb.mxu0 %v2978_v27 }
 0x524   :  { %1355 = vmatpush.msrb.mxu0 %v2987_v33 }
 0x526   :  { %1357 = vmatpush.msrb.mxu0 %v3003_v44 }
 0x528   :  { %1359 = vmatpush.msrb.mxu0 %v3010_v49 }
 0x58e   :  { %v927_v40 = vpop.f32.mrf.mxu1 }
 0x596   :  { %v886_v41 = vpop.f32.mrf.mxu0  ;;  %v957_v47 = vpop.f32.mrf.mxu2 }
 0x597   :  { %v887_v42 = vadd.f32 %v3151_v35, %v886_v41  ;;  %v1042_v62 = vpop.f32.mrf.mxu1 }
 0x598   :  { %v984_v54 = vpop.f32.mrf.mxu3 }
 0x599   :  { %v928_v46 = vadd.f32 %v927_v40, %v887_v42 }
 0x59b   :  { %v958_v50 = vadd.f32 %v957_v47, %v928_v46 }
 0x59d   :  { %v985_v56 = vadd.f32 %v984_v54, %v958_v50 }
 0x59e   :  { %v1017_v58 = vpop.f32.mrf.mxu0 }
 0x59f   :  { %v1018_v59 = vadd.f32 %v1017_v58, %v985_v56 }
 0x5a1   :  { %v1043_v0 = vadd.f32 %v1042_v62, %v1018_v59 }
 0x5a3   :  { %1066 = vrot.lane.b32.xlu1 %v1043_v0, %s2861_s13  ;;  %v1045_v3 = vadd.f32 %v1043_v0, %v856_v1 }
 0x5a5   :  { %v2598_v5 = vmul.f32 -1.442695, %v1045_v3 }
 0x5a7   :  { %2639 = vpow2.f32 %v2598_v5 }
 0x5ab   :  { %1082 = vrot.lane.b32.xlu1 %v854_v31, %s2863_s15 }
 0x5ad   :  { %v2640_v6 = vpop.eup %2639 }
 0x5ae   :  { %v1049_v7 = vadd.f32 1.0, %v2640_v6 }
 0x5b0   :  { %2641 = vrcp.f32 %v1049_v7  ;;  %v1061_v13 = vand.u32 2147483648, %v1049_v7  ;;  %vm1055_vm12 = vweird.f32 %v1049_v7  ;;  %v1059_v14 = vand.u32 2147483647, %v1049_v7 }
 0x5b2   :  { %v1062_v16 = vor.u32 1.1754944e-38, %v1061_v13  ;;  %vm1060_vm14 = vcmp.eq.f32.partialorder %v1059_v14, 8.507059e+37 }
 0x5b6   :  { %v2642_v8 = vpop.eup %2641 }
 0x5b7   :  { %v1051_v9 = vmul.f32 %v2642_v8, %v1049_v7  ;;  %vm1056_vm11 = vweird.f32 %v2642_v8 }
 0x5b8   :  { %vm1057_vm13 = vmor %vm1055_vm12, %vm1056_vm11 }
 0x5b9   :  { %v1052_v10 = vsub.f32 1.0, %v1051_v9 }
 0x5bb   :  { %v1053_v11 = vmul.f32 %v2642_v8, %v1052_v10 }
 0x5bd   :  { %v1054_v12 = vadd.f32 %v2642_v8, %v1053_v11 }
 0x5bf   :  { %v1058_v15 = vsel %vm1057_vm13, %v2642_v8, %v1054_v12 }
 0x5c0   :  { %v1063_v18 = vsel %vm1060_vm14, %v1062_v16, %v1058_v15 }
 0x5c1   :  { %v1076_v24 = vsub.f32 1.0, %v1063_v18 }
 0x615   :  { %v1067_v17 = vpop.permute.xlu1 %1066 }
 0x616   :  { %v1069_v19 = vmul.f32 %v1067_v17, %v1063_v18 }
 0x618   :  { %1071 = vrot.lane.b32.xlu2 %v1069_v19, %s2861_s13 }
 0x61d   :  { %v1083_v23 = vpop.permute.xlu1 %1082 }
 0x61e   :  { %v1085_v26 = vmul.f32 %v1083_v23, %v1063_v18 }
 0x672   :  { %v1072_v20 = vpop.permute.xlu2 %1071 }
 0x673   :  { %v1074_v21 = vadd.f32 %v1072_v20, %v856_v1  ;;  %v1096_v1 = vld [vmem:[#allocation3 + $0x6] sm:$0x3] }
 0x675   :  { %2643 = vtanh.f32 %v1074_v21 }
 0x67b   :  { %v2644_v22 = vpop.eup %2643 }
 0x67c   :  { %1078 = vrot.lane.b32.xlu0 %v2644_v22, %s2862_s14 }
 0x6ee   :  { %v1079_v25 = vpop.permute.xlu0 %1078 }
 0x6ef   :  { %v1081_v28 = vmul.f32 %v1079_v25, %v1076_v24 }
 0x6f1   :  { %v1086_v29 = vadd.f32 %v1085_v26, %v1081_v28 }
 0x6f3   :  { %1088 = vrot.lane.b32.xlu2 %v1086_v29, %s2862_s14 }
 0x74d   :  { %v1089_v30 = vpop.permute.xlu2 %1088 }
 0x74e   :  { %1091 = vst.msk [vmem:[#allocation2] sm:$0x3] %vm366_vm1, %v1089_v30 }
 0x74f   :  { %1093 = vst.msk [vmem:[#allocation4 + $0x4] sm:$0x3] %vm366_vm1, %v1089_v30 }
 0x755   :  { %v1094_v31 = vld [vmem:[#allocation2] sm:$0x3] }
 0x756   :  { %v2296_v32 = vld [vmem:[#allocation4 + $0x4] sm:$0x3]  ;;  %v1098_v34 = vsel %vm119_vm0, %v1094_v31, 0 }
 0x757   :  { %2322 = vst [vmem:[#allocation1 + $0x2] ss:$4 sm:$0xff] %v2296_v32  ;;  %v1120_v36 = vand.u32 4294901760, %v1098_v34 }
 0x759   :  { %1166 = vmatmul.f32.vlgmr.msrb.gmra.mxu3 %v1120_v36  ;;  %v1121_v45 = vsub.f32 %v1098_v34, %v1120_v36 }
 0x75a   :  { %1453 = vmatpush.msrb.mxu3 %v2978_v27 }
 0x75b   :  { %1196 = vmatmul.f32.vlgmr.msra.gmra.mxu0 %v1121_v45  ;;  %v1122_v37 = vand.u32 4294901760, %v1121_v45 }
 0x75c   :  { %1455 = vmatpush.msrb.mxu3 %v2987_v33  ;;  %1482 = vmatpush.msra.mxu0 %v3016_v51 }
 0x75d   :  { %1223 = vmatmul.f32.vlgmr.msra.gmra.mxu1 %v1122_v37  ;;  %v1123_v38 = vsub.f32 %v1121_v45, %v1122_v37 }
 0x75e   :  { %1457 = vmatpush.msrb.mxu3 %v3003_v44  ;;  %1513 = vmatpush.msra.mxu1 %v2978_v27 }
 0x75f   :  { %v1124_v39 = vand.u32 4294901760, %v1123_v38  ;;  %1486 = vmatpush.msra.mxu0 %v3024_v53 }
 0x760   :  { %1459 = vmatpush.msrb.mxu3 %v3010_v49  ;;  %1515 = vmatpush.msra.mxu1 %v2987_v33 }
 0x761   :  { %1125 = vmatmul.f32.vlgmr.msrb.gmra.mxu2 %v1124_v39  ;;  %1281 = vmatmul.f32.vlgmr.msra.gmra.mxu3 %v1120_v36 }
 0x762   :  { %1424 = vmatpush.msrb.mxu2 %v3001_v43  ;;  %1517 = vmatpush.msra.mxu1 %v3003_v44 }
 0x763   :  { %1490 = vmatpush.msra.mxu0 %v3037_v57  ;;  %1626 = vmatpush.msra.mxu3 %v3055_v61 }
 0x764   :  { %1427 = vmatpush.msrb.mxu2 %v3008_v48  ;;  %1519 = vmatpush.msra.mxu1 %v3010_v49 }
 0x765   :  { %1494 = vmatpush.msra.mxu0 %v3049_v60  ;;  %1632 = vmatpush.msra.mxu3 %v3064_v63 }
 0x766   :  { %1430 = vmatpush.msrb.mxu2 %v3019_v52 }
 0x767   :  { %1638 = vmatpush.msra.mxu3 %v3074_v2 }
 0x768   :  { %1433 = vmatpush.msrb.mxu2 %v3029_v55 }
 0x769   :  { %1256 = vmatmul.f32.vlgmr.msra.gmra.mxu2 %v1120_v36  ;;  %1644 = vmatpush.msra.mxu3 %v3082_v4 }
 0x76a   :  { %1593 = vmatpush.msra.mxu2 %v2978_v27 }
 0x76c   :  { %1595 = vmatpush.msra.mxu2 %v2987_v33 }
 0x76e   :  { %1597 = vmatpush.msra.mxu2 %v3003_v44 }
 0x770   :  { %1599 = vmatpush.msra.mxu2 %v3010_v49 }
 0x7d8   :  { %v1197_v47 = vpop.f32.mrf.mxu0 }
 0x7da   :  { %v1224_v54 = vpop.f32.mrf.mxu1 }
 0x7dc   :  { %v1167_v40 = vpop.f32.mrf.mxu3 }
 0x7e4   :  { %v1126_v41 = vpop.f32.mrf.mxu2  ;;  %v1282_v62 = vpop.f32.mrf.mxu3 }
 0x7e5   :  { %v1127_v42 = vadd.f32 %v3151_v35, %v1126_v41 }
 0x7e7   :  { %v1168_v46 = vadd.f32 %v1167_v40, %v1127_v42 }
 0x7e9   :  { %v1198_v50 = vadd.f32 %v1197_v47, %v1168_v46 }
 0x7eb   :  { %v1225_v56 = vadd.f32 %v1224_v54, %v1198_v50 }
 0x7ec   :  { %v1257_v58 = vpop.f32.mrf.mxu2 }
 0x7ed   :  { %v1258_v59 = vadd.f32 %v1257_v58, %v1225_v56 }
 0x7ef   :  { %v1283_v0 = vadd.f32 %v1282_v62, %v1258_v59 }
 0x7f1   :  { %1306 = vrot.lane.b32.xlu0 %v1283_v0, %s2861_s13  ;;  %v1285_v3 = vadd.f32 %v1283_v0, %v1096_v1 }
 0x7f3   :  { %v2599_v5 = vmul.f32 -1.442695, %v1285_v3 }
 0x7f5   :  { %2645 = vpow2.f32 %v2599_v5 }
 0x7f9   :  { %1322 = vrot.lane.b32.xlu0 %v1094_v31, %s2863_s15 }
 0x7fb   :  { %v2646_v6 = vpop.eup %2645 }
 0x7fc   :  { %v1289_v7 = vadd.f32 1.0, %v2646_v6 }
 0x7fe   :  { %2647 = vrcp.f32 %v1289_v7  ;;  %v1301_v13 = vand.u32 2147483648, %v1289_v7  ;;  %vm1295_vm2 = vweird.f32 %v1289_v7  ;;  %v1299_v14 = vand.u32 2147483647, %v1289_v7 }
 0x800   :  { %v1302_v16 = vor.u32 1.1754944e-38, %v1301_v13  ;;  %vm1300_vm4 = vcmp.eq.f32.partialorder %v1299_v14, 8.507059e+37 }
 0x804   :  { %v2648_v8 = vpop.eup %2647 }
 0x805   :  { %v1291_v9 = vmul.f32 %v2648_v8, %v1289_v7  ;;  %vm1296_vm15 = vweird.f32 %v2648_v8 }
 0x806   :  { %vm1297_vm3 = vmor %vm1295_vm2, %vm1296_vm15 }
 0x807   :  { %v1292_v10 = vsub.f32 1.0, %v1291_v9 }
 0x809   :  { %v1293_v11 = vmul.f32 %v2648_v8, %v1292_v10 }
 0x80b   :  { %v1294_v12 = vadd.f32 %v2648_v8, %v1293_v11 }
 0x80d   :  { %v1298_v15 = vsel %vm1297_vm3, %v2648_v8, %v1294_v12 }
 0x80e   :  { %v1303_v18 = vsel %vm1300_vm4, %v1302_v16, %v1298_v15 }
 0x80f   :  { %v1316_v24 = vsub.f32 1.0, %v1303_v18 }
 0x863   :  { %v1307_v17 = vpop.permute.xlu0 %1306 }
 0x864   :  { %v1309_v19 = vmul.f32 %v1307_v17, %v1303_v18 }
 0x866   :  { %1311 = vrot.lane.b32.xlu1 %v1309_v19, %s2861_s13 }
 0x86b   :  { %v1323_v23 = vpop.permute.xlu0 %1322 }
 0x86c   :  { %v1325_v26 = vmul.f32 %v1323_v23, %v1303_v18 }
 0x8d8   :  { %v1312_v20 = vpop.permute.xlu1 %1311 }
 0x8d9   :  { %v1314_v21 = vadd.f32 %v1312_v20, %v1096_v1  ;;  %v1336_v1 = vld [vmem:[#allocation3 + $0x8] sm:$0x3] }
 0x8db   :  { %2649 = vtanh.f32 %v1314_v21 }
 0x8e1   :  { %v2650_v22 = vpop.eup %2649 }
 0x8e2   :  { %1318 = vrot.lane.b32.xlu2 %v2650_v22, %s2862_s14 }
 0x93c   :  { %v1319_v25 = vpop.permute.xlu2 %1318 }
 0x93d   :  { %v1321_v28 = vmul.f32 %v1319_v25, %v1316_v24 }
 0x93f   :  { %v1326_v29 = vadd.f32 %v1325_v26, %v1321_v28 }
 0x941   :  { %1328 = vrot.lane.b32.xlu1 %v1326_v29, %s2862_s14 }
 0x9b3   :  { %v1329_v30 = vpop.permute.xlu1 %1328 }
 0x9b4   :  { %1331 = vst.msk [vmem:[#allocation2] sm:$0x3] %vm366_vm1, %v1329_v30 }
 0x9b5   :  { %1333 = vst.msk [vmem:[#allocation4 + $0x6] sm:$0x3] %vm366_vm1, %v1329_v30 }
 0x9bb   :  { %v1334_v31 = vld [vmem:[#allocation2] sm:$0x3] }
 0x9bc   :  { %v2297_v32 = vld [vmem:[#allocation4 + $0x6] sm:$0x3]  ;;  %v1338_v34 = vsel %vm119_vm0, %v1334_v31, 0 }
 0x9bd   :  { %2324 = vst [vmem:[#allocation1 + $0x3] ss:$4 sm:$0xff] %v2297_v32  ;;  %v1360_v36 = vand.u32 4294901760, %v1338_v34 }
 0x9bf   :  { %1406 = vmatmul.f32.vlgmr.msrb.gmra.mxu1 %v1360_v36  ;;  %v1361_v45 = vsub.f32 %v1338_v34, %v1360_v36 }
 0x9c0   :  { %1693 = vmatpush.msrb.mxu1 %v2978_v27 }
 0x9c1   :  { %1436 = vmatmul.f32.vlgmr.msrb.gmra.mxu2 %v1361_v45  ;;  %v1362_v37 = vand.u32 4294901760, %v1361_v45 }
 0x9c2   :  { %1695 = vmatpush.msrb.mxu1 %v2987_v33  ;;  %1722 = vmatpush.msrb.mxu2 %v3016_v51 }
 0x9c3   :  { %1463 = vmatmul.f32.vlgmr.msrb.gmra.mxu3 %v1362_v37  ;;  %v1363_v38 = vsub.f32 %v1361_v45, %v1362_v37 }
 0x9c4   :  { %1697 = vmatpush.msrb.mxu1 %v3003_v44  ;;  %1753 = vmatpush.msrb.mxu3 %v2978_v27 }
 0x9c5   :  { %v1364_v39 = vand.u32 4294901760, %v1363_v38  ;;  %1726 = vmatpush.msrb.mxu2 %v3024_v53 }
 0x9c6   :  { %1699 = vmatpush.msrb.mxu1 %v3010_v49  ;;  %1755 = vmatpush.msrb.mxu3 %v2987_v33 }
 0x9c7   :  { %1365 = vmatmul.f32.vlgmr.msrb.gmra.mxu0 %v1364_v39  ;;  %1521 = vmatmul.f32.vlgmr.msra.gmra.mxu1 %v1360_v36 }
 0x9c8   :  { %1664 = vmatpush.msrb.mxu0 %v3001_v43  ;;  %1757 = vmatpush.msrb.mxu3 %v3003_v44 }
 0x9c9   :  { %1730 = vmatpush.msrb.mxu2 %v3037_v57  ;;  %1866 = vmatpush.msra.mxu1 %v3055_v61 }
 0x9ca   :  { %1667 = vmatpush.msrb.mxu0 %v3008_v48  ;;  %1759 = vmatpush.msrb.mxu3 %v3010_v49 }
 0x9cb   :  { %1734 = vmatpush.msrb.mxu2 %v3049_v60  ;;  %1872 = vmatpush.msra.mxu1 %v3064_v63 }
 0x9cc   :  { %1670 = vmatpush.msrb.mxu0 %v3019_v52 }
 0x9cd   :  { %1878 = vmatpush.msra.mxu1 %v3074_v2 }
 0x9ce   :  { %1673 = vmatpush.msrb.mxu0 %v3029_v55 }
 0x9cf   :  { %1496 = vmatmul.f32.vlgmr.msra.gmra.mxu0 %v1360_v36  ;;  %1884 = vmatpush.msra.mxu1 %v3082_v4 }
 0x9d0   :  { %1833 = vmatpush.msra.mxu0 %v2978_v27 }
 0x9d2   :  { %1835 = vmatpush.msra.mxu0 %v2987_v33 }
 0x9d4   :  { %1837 = vmatpush.msra.mxu0 %v3003_v44 }
 0x9d6   :  { %1839 = vmatpush.msra.mxu0 %v3010_v49 }
 0xa3c   :  { %v1407_v40 = vpop.f32.mrf.mxu1 }
 0xa44   :  { %v1366_v41 = vpop.f32.mrf.mxu0  ;;  %v1437_v47 = vpop.f32.mrf.mxu2 }
 0xa45   :  { %v1367_v42 = vadd.f32 %v3151_v35, %v1366_v41  ;;  %v1522_v62 = vpop.f32.mrf.mxu1 }
 0xa46   :  { %v1464_v54 = vpop.f32.mrf.mxu3 }
 0xa47   :  { %v1408_v46 = vadd.f32 %v1407_v40, %v1367_v42 }
 0xa49   :  { %v1438_v50 = vadd.f32 %v1437_v47, %v1408_v46 }
 0xa4b   :  { %v1465_v56 = vadd.f32 %v1464_v54, %v1438_v50 }
 0xa4c   :  { %v1497_v58 = vpop.f32.mrf.mxu0 }
 0xa4d   :  { %v1498_v59 = vadd.f32 %v1497_v58, %v1465_v56  ;;  %v1576_v58 = vld [vmem:[#allocation3 + $0xa] sm:$0x3] }
 0xa4f   :  { %v1523_v0 = vadd.f32 %v1522_v62, %v1498_v59 }
 0xa51   :  { %1546 = vrot.lane.b32.xlu2 %v1523_v0, %s2861_s13  ;;  %v1525_v3 = vadd.f32 %v1523_v0, %v1336_v1 }
 0xa53   :  { %v2600_v5 = vmul.f32 -1.442695, %v1525_v3 }
 0xa55   :  { %2651 = vpow2.f32 %v2600_v5 }
 0xa59   :  { %1562 = vrot.lane.b32.xlu2 %v1334_v31, %s2863_s15 }
 0xa5b   :  { %v2652_v6 = vpop.eup %2651 }
 0xa5c   :  { %v1529_v7 = vadd.f32 1.0, %v2652_v6 }
 0xa5e   :  { %2653 = vrcp.f32 %v1529_v7  ;;  %v1541_v13 = vand.u32 2147483648, %v1529_v7  ;;  %vm1535_vm6 = vweird.f32 %v1529_v7  ;;  %v1539_v14 = vand.u32 2147483647, %v1529_v7 }
 0xa60   :  { %v1542_v16 = vor.u32 1.1754944e-38, %v1541_v13  ;;  %vm1540_vm8 = vcmp.eq.f32.partialorder %v1539_v14, 8.507059e+37 }
 0xa64   :  { %v2654_v8 = vpop.eup %2653 }
 0xa65   :  { %v1531_v9 = vmul.f32 %v2654_v8, %v1529_v7  ;;  %vm1536_vm5 = vweird.f32 %v2654_v8 }
 0xa66   :  { %vm1537_vm7 = vmor %vm1535_vm6, %vm1536_vm5 }
 0xa67   :  { %v1532_v10 = vsub.f32 1.0, %v1531_v9 }
 0xa69   :  { %v1533_v11 = vmul.f32 %v2654_v8, %v1532_v10 }
 0xa6b   :  { %v1534_v12 = vadd.f32 %v2654_v8, %v1533_v11 }
 0xa6d   :  { %v1538_v15 = vsel %vm1537_vm7, %v2654_v8, %v1534_v12 }
 0xa6e   :  { %v1543_v18 = vsel %vm1540_vm8, %v1542_v16, %v1538_v15 }
 0xa6f   :  { %v1556_v24 = vsub.f32 1.0, %v1543_v18 }
 0xaab   :  { %v1547_v17 = vpop.permute.xlu2 %1546 }
 0xaac   :  { %v1549_v19 = vmul.f32 %v1547_v17, %v1543_v18 }
 0xaae   :  { %1551 = vrot.lane.b32.xlu0 %v1549_v19, %s2861_s13 }
 0xab3   :  { %v1563_v23 = vpop.permute.xlu2 %1562 }
 0xab4   :  { %v1565_v26 = vmul.f32 %v1563_v23, %v1543_v18 }
 0xb20   :  { %v1552_v20 = vpop.permute.xlu0 %1551 }
 0xb21   :  { %v1554_v21 = vadd.f32 %v1552_v20, %v1336_v1 }
 0xb23   :  { %2655 = vtanh.f32 %v1554_v21 }
 0xb29   :  { %v2656_v22 = vpop.eup %2655 }
 0xb2a   :  { %1558 = vrot.lane.b32.xlu1 %v2656_v22, %s2862_s14 }
 0xb9c   :  { %v1559_v25 = vpop.permute.xlu1 %1558 }
 0xb9d   :  { %v1561_v28 = vmul.f32 %v1559_v25, %v1556_v24 }
 0xb9f   :  { %v1566_v29 = vadd.f32 %v1565_v26, %v1561_v28 }
 0xba1   :  { %1568 = vrot.lane.b32.xlu0 %v1566_v29, %s2862_s14 }
 0xc13   :  { %v1569_v30 = vpop.permute.xlu0 %1568 }
 0xc14   :  { %1571 = vst.msk [vmem:[#allocation2] sm:$0x3] %vm366_vm1, %v1569_v30 }
 0xc15   :  { %1573 = vst.msk [vmem:[#allocation4 + $0x8] sm:$0x3] %vm366_vm1, %v1569_v30 }
 0xc1b   :  { %v1574_v31 = vld [vmem:[#allocation2] sm:$0x3] }
 0xc1c   :  { %v2298_v32 = vld [vmem:[#allocation4 + $0x8] sm:$0x3]  ;;  %v1578_v34 = vsel %vm119_vm0, %v1574_v31, 0 }
 0xc1d   :  { %2326 = vst [vmem:[#allocation1 + $0x20] ss:$4 sm:$0xff] %v2298_v32  ;;  %v1600_v36 = vand.u32 4294901760, %v1578_v34 }
 0xc1f   :  { %1646 = vmatmul.f32.vlgmr.msra.gmra.mxu3 %v1600_v36  ;;  %v1601_v45 = vsub.f32 %v1578_v34, %v1600_v36 }
 0xc20   :  { %1933 = vmatpush.msra.mxu3 %v2978_v27 }
 0xc21   :  { %1676 = vmatmul.f32.vlgmr.msrb.gmra.mxu0 %v1601_v45  ;;  %v1602_v37 = vand.u32 4294901760, %v1601_v45 }
 0xc22   :  { %1935 = vmatpush.msra.mxu3 %v2987_v33  ;;  %1962 = vmatpush.msrb.mxu0 %v3016_v51 }
 0xc23   :  { %1703 = vmatmul.f32.vlgmr.msrb.gmra.mxu1 %v1602_v37  ;;  %v1603_v38 = vsub.f32 %v1601_v45, %v1602_v37 }
 0xc24   :  { %1937 = vmatpush.msra.mxu3 %v3003_v44  ;;  %1993 = vmatpush.msrb.mxu1 %v2978_v27 }
 0xc25   :  { %v1604_v39 = vand.u32 4294901760, %v1603_v38  ;;  %1966 = vmatpush.msrb.mxu0 %v3024_v53 }
 0xc26   :  { %1939 = vmatpush.msra.mxu3 %v3010_v49  ;;  %1995 = vmatpush.msrb.mxu1 %v2987_v33 }
 0xc27   :  { %1605 = vmatmul.f32.vlgmr.msra.gmra.mxu2 %v1604_v39  ;;  %1761 = vmatmul.f32.vlgmr.msrb.gmra.mxu3 %v1600_v36 }
 0xc28   :  { %1904 = vmatpush.msra.mxu2 %v3001_v43  ;;  %1997 = vmatpush.msrb.mxu1 %v3003_v44 }
 0xc29   :  { %1970 = vmatpush.msrb.mxu0 %v3037_v57  ;;  %2106 = vmatpush.msrb.mxu3 %v3055_v61 }
 0xc2a   :  { %1907 = vmatpush.msra.mxu2 %v3008_v48  ;;  %1999 = vmatpush.msrb.mxu1 %v3010_v49 }
 0xc2b   :  { %1974 = vmatpush.msrb.mxu0 %v3049_v60  ;;  %2112 = vmatpush.msrb.mxu3 %v3064_v63 }
 0xc2c   :  { %1910 = vmatpush.msra.mxu2 %v3019_v52 }
 0xc2d   :  { %2118 = vmatpush.msrb.mxu3 %v3074_v2 }
 0xc2e   :  { %1913 = vmatpush.msra.mxu2 %v3029_v55 }
 0xc2f   :  { %1736 = vmatmul.f32.vlgmr.msrb.gmra.mxu2 %v1600_v36  ;;  %2124 = vmatpush.msrb.mxu3 %v3082_v4 }
 0xc30   :  { %2073 = vmatpush.msrb.mxu2 %v2978_v27 }
 0xc32   :  { %2075 = vmatpush.msrb.mxu2 %v2987_v33 }
 0xc34   :  { %2077 = vmatpush.msrb.mxu2 %v3003_v44 }
 0xc36   :  { %2079 = vmatpush.msrb.mxu2 %v3010_v49 }
 0xc9e   :  { %v1677_v42 = vpop.f32.mrf.mxu0 }
 0xca0   :  { %v1704_v46 = vpop.f32.mrf.mxu1 }
 0xca2   :  { %v1647_v61 = vpop.f32.mrf.mxu3 }
 0xcaa   :  { %v1606_v40 = vpop.f32.mrf.mxu2  ;;  %v1762_v4 = vpop.f32.mrf.mxu3 }
 0xcab   :  { %v1607_v63 = vadd.f32 %v3151_v35, %v1606_v40 }
 0xcad   :  { %v1648_v41 = vadd.f32 %v1647_v61, %v1607_v63 }
 0xcaf   :  { %v1678_v2 = vadd.f32 %v1677_v42, %v1648_v41 }
 0xcb1   :  { %v1705_v47 = vadd.f32 %v1704_v46, %v1678_v2 }
 0xcb2   :  { %v1737_v50 = vpop.f32.mrf.mxu2 }
 0xcb3   :  { %v1738_v54 = vadd.f32 %v1737_v50, %v1705_v47 }
 0xcb5   :  { %v1763_v56 = vadd.f32 %v1762_v4, %v1738_v54 }
 0xcb7   :  { %1786 = vrot.lane.b32.xlu1 %v1763_v56, %s2861_s13  ;;  %v1765_v59 = vadd.f32 %v1763_v56, %v1576_v58 }
 0xcb9   :  { %v2601_v62 = vmul.f32 -1.442695, %v1765_v59 }
 0xcbb   :  { %2657 = vpow2.f32 %v2601_v62 }
 0xcbf   :  { %1802 = vrot.lane.b32.xlu1 %v1574_v31, %s2863_s15 }
 0xcc1   :  { %v2658_v0 = vpop.eup %2657 }
 0xcc2   :  { %v1769_v1 = vadd.f32 1.0, %v2658_v0 }
 0xcc4   :  { %2659 = vrcp.f32 %v1769_v1  ;;  %v1781_v8 = vand.u32 2147483648, %v1769_v1  ;;  %vm1775_vm10 = vweird.f32 %v1769_v1  ;;  %v1779_v9 = vand.u32 2147483647, %v1769_v1 }
 0xcc6   :  { %v1782_v11 = vor.u32 1.1754944e-38, %v1781_v8  ;;  %vm1780_vm12 = vcmp.eq.f32.partialorder %v1779_v9, 8.507059e+37  ;;  %v2305_v8 = vld [vmem:[#allocation13 + $0x18] sm:$0xff] }
 0xcc7   :  { %v2351_v9 = vand.u32 4294901760, %v2305_v8 }
 0xcca   :  { %v2660_v35 = vpop.eup %2659 }
 0xccb   :  { %v1771_v3 = vmul.f32 %v2660_v35, %v1769_v1  ;;  %vm1776_vm9 = vweird.f32 %v2660_v35 }
 0xccc   :  { %vm1777_vm11 = vmor %vm1775_vm10, %vm1776_vm9 }
 0xccd   :  { %v1772_v5 = vsub.f32 1.0, %v1771_v3 }
 0xccf   :  { %v1773_v6 = vmul.f32 %v2660_v35, %v1772_v5 }
 0xcd1   :  { %v1774_v7 = vadd.f32 %v2660_v35, %v1773_v6 }
 0xcd3   :  { %v1778_v10 = vsel %vm1777_vm11, %v2660_v35, %v1774_v7 }
 0xcd4   :  { %v1783_v13 = vsel %vm1780_vm12, %v1782_v11, %v1778_v10  ;;  %v2304_v10 = vld [vmem:[#allocation13 + $0x10] sm:$0xff]  ;;  %v2389_v11 = vsub.f32 %v2305_v8, %v2351_v9 }
 0xcd5   :  { %v1796_v19 = vsub.f32 1.0, %v1783_v13 }
 0xd29   :  { %v1787_v12 = vpop.permute.xlu1 %1786 }
 0xd2a   :  { %v1789_v14 = vmul.f32 %v1787_v12, %v1783_v13  ;;  %v2353_v12 = vand.u32 4294901760, %v2304_v10 }
 0xd2c   :  { %1791 = vrot.lane.b32.xlu2 %v1789_v14, %s2861_s13  ;;  %v2390_v14 = vand.u32 4294901760, %v2389_v11 }
 0xd31   :  { %v1803_v18 = vpop.permute.xlu1 %1802 }
 0xd32   :  { %v1805_v21 = vmul.f32 %v1803_v18, %v1783_v13  ;;  %v2303_v13 = vld [vmem:[#allocation13 + $0x8] sm:$0xff]  ;;  %v2391_v18 = vsub.f32 %v2389_v11, %v2390_v14 }
 0xd86   :  { %v1792_v15 = vpop.permute.xlu2 %1791 }
 0xd87   :  { %v1794_v16 = vadd.f32 %v1792_v15, %v1576_v58  ;;  %v2355_v15 = vand.u32 4294901760, %v2303_v13 }
 0xd89   :  { %2661 = vtanh.f32 %v1794_v16  ;;  %v2395_v16 = vsub.f32 %v2304_v10, %v2353_v12 }
 0xd8f   :  { %v2662_v17 = vpop.eup %2661 }
 0xd90   :  { %1798 = vrot.lane.b32.xlu0 %v2662_v17, %s2862_s14  ;;  %v2302_v17 = vld [vmem:[#allocation13] sm:$0xff] }
 0xe02   :  { %v1799_v20 = vpop.permute.xlu0 %1798 }
 0xe03   :  { %v1801_v22 = vmul.f32 %v1799_v20, %v1796_v19  ;;  %v2396_v19 = vand.u32 4294901760, %v2395_v16  ;;  %v2357_v20 = vand.u32 4294901760, %v2302_v17 }
 0xe05   :  { %v1806_v23 = vadd.f32 %v1805_v21, %v1801_v22  ;;  %v2401_v21 = vsub.f32 %v2303_v13, %v2355_v15  ;;  %v2392_v22 = vand.u32 4294901760, %v2391_v18 }
 0xe07   :  { %1808 = vrot.lane.b32.xlu2 %v1806_v23, %s2862_s14  ;;  %v2397_v23 = vsub.f32 %v2395_v16, %v2396_v19 }
 0xe61   :  { %v1809_v24 = vpop.permute.xlu2 %1808 }
 0xe62   :  { %1811 = vst.msk [vmem:[#allocation2] sm:$0x3] %vm366_vm1, %v1809_v24 }
 0xe63   :  { %1813 = vst.msk [vmem:[#allocation4 + $0xa] sm:$0x3] %vm366_vm1, %v1809_v24  ;;  %v2402_v24 = vand.u32 4294901760, %v2401_v21 }
 0xe69   :  { %v1814_v25 = vld [vmem:[#allocation2] sm:$0x3] }
 0xe6a   :  { %v2299_v26 = vld [vmem:[#allocation4 + $0xa] sm:$0x3]  ;;  %v1818_v28 = vsel %vm119_vm0, %v1814_v25, 0 }
 0xe6b   :  { %2328 = vst [vmem:[#allocation1 + $0x21] ss:$4 sm:$0xff] %v2299_v26  ;;  %v1840_v29 = vand.u32 4294901760, %v1818_v28  ;;  %v2398_v26 = vand.u32 4294901760, %v2397_v23 }
 0xe6d   :  { %1886 = vmatmul.f32.vlgmr.msra.gmra.mxu1 %v1840_v29  ;;  %v1841_v30 = vsub.f32 %v1818_v28, %v1840_v29  ;;  %v2403_v28 = vsub.f32 %v2401_v21, %v2402_v24 }
 0xe6e   :  { %2173 = vmatpush.msra.mxu1 %v2978_v27 }
 0xe6f   :  { %1916 = vmatmul.f32.vlgmr.msra.gmra.mxu2 %v1841_v30  ;;  %v1842_v31 = vand.u32 4294901760, %v1841_v30 }
 0xe70   :  { %2175 = vmatpush.msra.mxu1 %v2987_v33  ;;  %2202 = vmatpush.msra.mxu2 %v3016_v51 }
 0xe71   :  { %1943 = vmatmul.f32.vlgmr.msra.gmra.mxu3 %v1842_v31  ;;  %v1843_v32 = vsub.f32 %v1841_v30, %v1842_v31  ;;  %v2404_v30 = vand.u32 4294901760, %v2403_v28 }
 0xe72   :  { %2177 = vmatpush.msra.mxu1 %v3003_v44  ;;  %2233 = vmatpush.msra.mxu3 %v2978_v27 }
 0xe73   :  { %v1844_v34 = vand.u32 4294901760, %v1843_v32  ;;  %2206 = vmatpush.msra.mxu2 %v3024_v53 }
 0xe74   :  { %2179 = vmatpush.msra.mxu1 %v3010_v49  ;;  %2235 = vmatpush.msra.mxu3 %v2987_v33 }
 0xe75   :  { %1845 = vmatmul.f32.vlgmr.msra.gmra.mxu0 %v1844_v34  ;;  %2001 = vmatmul.f32.vlgmr.msrb.gmra.mxu1 %v1840_v29  ;;  %v2333_v34 = vld.sshfl [vmem:[#allocation1] sm:$0xff pattern:$0x73625140] }
 0xe76   :  { %2144 = vmatpush.msra.mxu0 %v3001_v43  ;;  %2237 = vmatpush.msra.mxu3 %v3003_v44  ;;  %v3351_v43 = vld [vmem:[%s3398_s5] ss:$0 sm:$0xff]  ;;  %s2864_s5 = smov [#allocation15]  }
 0xe77   :  { %2210 = vmatpush.msra.mxu2 %v3037_v57  ;;  %2393 = vmatpush.msrb.mxu1 %v2392_v22  ;;  %s2577_s18 = sshll.u32 %s2864_s5, 4  ;;  %s2578_s18 = int_to_ptr.vmem [resolvable:$true] %s2577_s18 }
 0xe78   :  { %2147 = vmatpush.msra.mxu0 %v3008_v48  ;;  %2239 = vmatpush.msra.mxu3 %v3010_v49 }
 0xe79   :  { %2214 = vmatpush.msra.mxu2 %v3049_v60  ;;  %2399 = vmatpush.msrb.mxu1 %v2398_v26 }
 0xe7a   :  { %2150 = vmatpush.msra.mxu0 %v3019_v52 }
 0xe7b   :  { %2405 = vmatpush.msrb.mxu1 %v2404_v30 }
 0xe7c   :  { %2153 = vmatpush.msra.mxu0 %v3029_v55  ;;  %v1816_v55 = vld [vmem:[#allocation3 + $0xc] sm:$0x3] }
 0xe7d   :  { %1976 = vmatmul.f32.vlgmr.msrb.gmra.mxu0 %v1840_v29 }
 0xe7e   :  { %2352 = vmatpush.msrb.mxu0 %v2351_v9 }
 0xe80   :  { %2354 = vmatpush.msrb.mxu0 %v2353_v12 }
 0xe82   :  { %2356 = vmatpush.msrb.mxu0 %v2355_v15 }
 0xe84   :  { %2358 = vmatpush.msrb.mxu0 %v2357_v20 }
 0xeea   :  { %v1887_v27 = vpop.f32.mrf.mxu1 }
 0xef2   :  { %v1846_v33 = vpop.f32.mrf.mxu0  ;;  %v1917_v48 = vpop.f32.mrf.mxu2 }
 0xef3   :  { %v1847_v44 = vadd.f32 %v3351_v43, %v1846_v33  ;;  %v2002_v52 = vpop.f32.mrf.mxu1  ;;  %v2335_v33 = vsel %vm119_vm0, %v2333_v34, 0 }
 0xef4   :  { %v1944_v49 = vpop.f32.mrf.mxu3 }
 0xef5   :  { %v1888_v51 = vadd.f32 %v1887_v27, %v1847_v44  ;;  %v3362_v44 = vand.u32 4294901760, %v2335_v33 }
 0xef7   :  { %v1918_v53 = vadd.f32 %v1917_v48, %v1888_v51  ;;  %v2360_v48 = vsub.f32 %v2335_v33, %v3362_v44  ;;  %v2626_v33 = vld [vmem:[%s3400_s7] ss:$0 sm:$0xff]  ;;  %s2865_s7 = smov [#allocation14]  }
 0xef8   :  { %s2563_s9 = sshll.u32 %s2865_s7, 4  ;;  %s2564_s9 = int_to_ptr.vmem [resolvable:$true] %s2563_s9 }
 0xef9   :  { %v1945_v57 = vadd.f32 %v1944_v49, %v1918_v53 }
 0xefa   :  { %v1977_v60 = vpop.f32.mrf.mxu0 }
 0xefb   :  { %v1978_v36 = vadd.f32 %v1977_v60, %v1945_v57 }
 0xefd   :  { %v2003_v45 = vadd.f32 %v2002_v52, %v1978_v36  ;;  %v2361_v36 = vand.u32 4294901760, %v2360_v48 }
 0xeff   :  { %2026 = vrot.lane.b32.xlu0 %v2003_v45, %s2861_s13  ;;  %v2005_v37 = vadd.f32 %v2003_v45, %v1816_v55 }
 0xf01   :  { %v2602_v38 = vmul.f32 -1.442695, %v2005_v37 }
 0xf03   :  { %2663 = vpow2.f32 %v2602_v38 }
 0xf07   :  { %2042 = vrot.lane.b32.xlu0 %v1814_v25, %s2863_s15  ;;  %v2407_v25 = vsub.f32 %v2302_v17, %v2357_v20 }
 0xf09   :  { %v2664_v39 = vpop.eup %2663  ;;  %v2408_v29 = vand.u32 4294901760, %v2407_v25 }
 0xf0a   :  { %v2009_v61 = vadd.f32 1.0, %v2664_v39 }
 0xf0b   :  { %v2409_v31 = vsub.f32 %v2407_v25, %v2408_v29 }
 0xf0c   :  { %2665 = vrcp.f32 %v2009_v61  ;;  %v2021_v46 = vand.u32 2147483648, %v2009_v61  ;;  %vm2015_vm14 = vweird.f32 %v2009_v61  ;;  %v2019_v47 = vand.u32 2147483647, %v2009_v61 }
 0xf0d   :  { %v2410_v32 = vand.u32 4294901760, %v2409_v31 }
 0xf0e   :  { %v2022_v54 = vor.u32 1.1754944e-38, %v2021_v46  ;;  %vm2020_vm2 = vcmp.eq.f32.partialorder %v2019_v47, 8.507059e+37 }
 0xf0f   :  { %2411 = vmatpush.msrb.mxu1 %v2410_v32 }
 0xf12   :  { %v2666_v40 = vpop.eup %2665 }
 0xf13   :  { %v2011_v63 = vmul.f32 %v2666_v40, %v2009_v61  ;;  %vm2016_vm13 = vweird.f32 %v2666_v40 }
 0xf14   :  { %vm2017_vm15 = vmor %vm2015_vm14, %vm2016_vm13 }
 0xf15   :  { %v2012_v41 = vsub.f32 1.0, %v2011_v63 }
 0xf17   :  { %v2013_v42 = vmul.f32 %v2666_v40, %v2012_v41 }
 0xf19   :  { %v2014_v2 = vadd.f32 %v2666_v40, %v2013_v42 }
 0xf1b   :  { %v2018_v50 = vsel %vm2017_vm15, %v2666_v40, %v2014_v2 }
 0xf1c   :  { %v2023_v56 = vsel %vm2020_vm2, %v2022_v54, %v2018_v50 }
 0xf1d   :  { %v2036_v35 = vsub.f32 1.0, %v2023_v56 }
 0xf71   :  { %v2027_v4 = vpop.permute.xlu0 %2026 }
 0xf72   :  { %v2029_v58 = vmul.f32 %v2027_v4, %v2023_v56 }
 0xf74   :  { %2031 = vrot.lane.b32.xlu1 %v2029_v58, %s2861_s13 }
 0xf79   :  { %v2043_v1 = vpop.permute.xlu0 %2042 }
 0xf7a   :  { %v2045_v5 = vmul.f32 %v2043_v1, %v2023_v56  ;;  %v2056_v56 = vld [vmem:[#allocation3 + $0xe] sm:$0x3] }
 0xfe6   :  { %v2032_v59 = vpop.permute.xlu1 %2031 }
 0xfe7   :  { %v2034_v62 = vadd.f32 %v2032_v59, %v1816_v55  ;;  %v2362_v55 = vsub.f32 %v2360_v48, %v2361_v36 }
 0xfe9   :  { %2667 = vtanh.f32 %v2034_v62  ;;  %v2363_v38 = vand.u32 4294901760, %v2362_v55 }
 0xfef   :  { %v2668_v0 = vpop.eup %2667 }
 0xff0   :  { %2038 = vrot.lane.b32.xlu2 %v2668_v0, %s2862_s14 }
0x104a   :  { %v2039_v3 = vpop.permute.xlu2 %2038 }
0x104b   :  { %v2041_v6 = vmul.f32 %v2039_v3, %v2036_v35 }
0x104d   :  { %v2046_v7 = vadd.f32 %v2045_v5, %v2041_v6 }
0x104f   :  { %2048 = vrot.lane.b32.xlu1 %v2046_v7, %s2862_s14 }
0x10c1   :  { %v2049_v27 = vpop.permute.xlu1 %2048 }
0x10c2   :  { %2051 = vst.msk [vmem:[#allocation2] sm:$0x3] %vm366_vm1, %v2049_v27 }
0x10c3   :  { %2053 = vst.msk [vmem:[#allocation4 + $0xc] sm:$0x3] %vm366_vm1, %v2049_v27 }
0x10c9   :  { %v2054_v51 = vld [vmem:[#allocation2] sm:$0x3] }
0x10ca   :  { %v2300_v53 = vld [vmem:[#allocation4 + $0xc] sm:$0x3]  ;;  %v2058_v49 = vsel %vm119_vm0, %v2054_v51, 0 }
0x10cb   :  { %2330 = vst [vmem:[#allocation1 + $0x22] ss:$4 sm:$0xff] %v2300_v53  ;;  %v2080_v57 = vand.u32 4294901760, %v2058_v49 }
0x10cd   :  { %2126 = vmatmul.f32.vlgmr.msrb.gmra.mxu3 %v2080_v57  ;;  %v2081_v60 = vsub.f32 %v2058_v49, %v2080_v57 }
0x10ce   :  { %2469 = vmatpush.msrb.mxu3 %v2351_v9 }
0x10cf   :  { %2156 = vmatmul.f32.vlgmr.msra.gmra.mxu0 %v2081_v60  ;;  %v2082_v52 = vand.u32 4294901760, %v2081_v60 }
0x10d0   :  { %2471 = vmatpush.msrb.mxu3 %v2353_v12  ;;  %2504 = vmatpush.msra.mxu0 %v2390_v14 }
0x10d1   :  { %2183 = vmatmul.f32.vlgmr.msra.gmra.mxu1 %v2082_v52  ;;  %v2083_v45 = vsub.f32 %v2081_v60, %v2082_v52 }
0x10d2   :  { %2473 = vmatpush.msrb.mxu3 %v2355_v15  ;;  %2539 = vmatpush.msra.mxu1 %v2351_v9 }
0x10d3   :  { %v2084_v37 = vand.u32 4294901760, %v2083_v45  ;;  %2508 = vmatpush.msra.mxu0 %v2396_v19 }
0x10d4   :  { %2475 = vmatpush.msrb.mxu3 %v2357_v20  ;;  %2541 = vmatpush.msra.mxu1 %v2353_v12 }
0x10d5   :  { %2085 = vmatmul.f32.vlgmr.msrb.gmra.mxu2 %v2084_v37  ;;  %2241 = vmatmul.f32.vlgmr.msra.gmra.mxu3 %v2080_v57 }
0x10d6   :  { %2435 = vmatpush.msrb.mxu2 %v2389_v11  ;;  %2543 = vmatpush.msra.mxu1 %v2355_v15 }
0x10d7   :  { %2364 = vmatmul.f32.vlgmr.msrb.gmra.mxu0 %v2363_v38 }
0x10d8   :  { %2438 = vmatpush.msrb.mxu2 %v2395_v16  ;;  %2545 = vmatpush.msra.mxu1 %v2357_v20 }
0x10d9   :  { %2413 = vmatmul.f32.vlgmr.msrb.gmra.mxu1 %v3362_v44  ;;  %2512 = vmatpush.msra.mxu0 %v2402_v24 }
0x10da   :  { %2441 = vmatpush.msrb.mxu2 %v2401_v21 }
0x10db   :  { %2516 = vmatpush.msra.mxu0 %v2408_v29 }
0x10dc   :  { %2444 = vmatpush.msrb.mxu2 %v2407_v25 }
0x10dd   :  { %2216 = vmatmul.f32.vlgmr.msra.gmra.mxu2 %v2080_v57  ;;  %2479 = vmatmul.f32.vlgmr.msrb.gmra.mxu3 %v2361_v36 }
0x10e5   :  { %2447 = vmatmul.f32.vlgmr.msrb.gmra.mxu2 %v2360_v48 }
0x114c   :  { %v2157_v41 = vpop.f32.mrf.mxu0 }
0x114e   :  { %v2184_v2 = vpop.f32.mrf.mxu1 }
0x1150   :  { %v2127_v39 = vpop.f32.mrf.mxu3 }
0x1154   :  { %v2365_v27 = vpop.f32.mrf.mxu0 }
0x1156   :  { %v2414_v34 = vpop.f32.mrf.mxu1 }
0x1158   :  { %v2086_v61 = vpop.f32.mrf.mxu2  ;;  %v2242_v54 = vpop.f32.mrf.mxu3 }
0x1159   :  { %v2087_v40 = vadd.f32 %v3351_v43, %v2086_v61 }
0x115b   :  { %v2128_v63 = vadd.f32 %v2127_v39, %v2087_v40 }
0x115d   :  { %v2158_v42 = vadd.f32 %v2157_v41, %v2128_v63 }
0x115f   :  { %v2185_v46 = vadd.f32 %v2184_v2, %v2158_v42 }
0x1160   :  { %v2217_v47 = vpop.f32.mrf.mxu2  ;;  %v2480_v36 = vpop.f32.mrf.mxu3 }
0x1161   :  { %v2218_v50 = vadd.f32 %v2217_v47, %v2185_v46 }
0x1163   :  { %v2243_v4 = vadd.f32 %v2242_v54, %v2218_v50 }
0x1165   :  { %2266 = vrot.lane.b32.xlu2 %v2243_v4, %s2861_s13  ;;  %v2245_v58 = vadd.f32 %v2243_v4, %v2056_v56 }
0x1167   :  { %v2603_v59 = vmul.f32 -1.442695, %v2245_v58 }
0x1169   :  { %2669 = vpow2.f32 %v2603_v59 }
0x116d   :  { %2282 = vrot.lane.b32.xlu2 %v2054_v51, %s2863_s15  ;;  %v2366_v51 = vadd.f32 %v2626_v33, %v2365_v27 }
0x116f   :  { %v2670_v62 = vpop.eup %2669  ;;  %v2415_v49 = vadd.f32 %v2414_v34, %v2366_v51 }
0x1170   :  { %v2249_v0 = vadd.f32 1.0, %v2670_v62 }
0x1172   :  { %2671 = vrcp.f32 %v2249_v0  ;;  %v2261_v6 = vand.u32 2147483648, %v2249_v0  ;;  %vm2255_vm4 = vweird.f32 %v2249_v0  ;;  %v2259_v7 = vand.u32 2147483647, %v2249_v0 }
0x1174   :  { %v2262_v9 = vor.u32 1.1754944e-38, %v2261_v6  ;;  %vm2260_vm6 = vcmp.eq.f32.partialorder %v2259_v7, 8.507059e+37 }
0x1178   :  { %v2672_v43 = vpop.eup %2671 }
0x1179   :  { %v2251_v1 = vmul.f32 %v2672_v43, %v2249_v0  ;;  %vm2256_vm3 = vweird.f32 %v2672_v43 }
0x117a   :  { %vm2257_vm5 = vmor %vm2255_vm4, %vm2256_vm3 }
0x117b   :  { %v2252_v35 = vsub.f32 1.0, %v2251_v1 }
0x117d   :  { %v2253_v3 = vmul.f32 %v2672_v43, %v2252_v35 }
0x117f   :  { %v2254_v5 = vadd.f32 %v2672_v43, %v2253_v3 }
0x1181   :  { %v2258_v8 = vsel %vm2257_vm5, %v2672_v43, %v2254_v5 }
0x1182   :  { %v2263_v11 = vsel %vm2260_vm6, %v2262_v9, %v2258_v8 }
0x1183   :  { %v2276_v17 = vsub.f32 1.0, %v2263_v11 }
0x11bf   :  { %v2267_v10 = vpop.permute.xlu2 %2266 }
0x11c0   :  { %v2269_v12 = vmul.f32 %v2267_v10, %v2263_v11 }
0x11c2   :  { %2271 = vrot.lane.b32.xlu0 %v2269_v12, %s2861_s13 }
0x11c7   :  { %v2283_v16 = vpop.permute.xlu2 %2282 }
0x11c8   :  { %v2285_v19 = vmul.f32 %v2283_v16, %v2263_v11 }
0x1234   :  { %v2272_v13 = vpop.permute.xlu0 %2271 }
0x1235   :  { %v2274_v14 = vadd.f32 %v2272_v13, %v2056_v56 }
0x1237   :  { %2673 = vtanh.f32 %v2274_v14 }
0x123d   :  { %v2674_v15 = vpop.eup %2673 }
0x123e   :  { %2278 = vrot.lane.b32.xlu1 %v2674_v15, %s2862_s14 }
0x12b0   :  { %v2279_v18 = vpop.permute.xlu1 %2278 }
0x12b1   :  { %v2281_v20 = vmul.f32 %v2279_v18, %v2276_v17 }
0x12b3   :  { %v2286_v21 = vadd.f32 %v2285_v19, %v2281_v20 }
0x12b5   :  { %2288 = vrot.lane.b32.xlu0 %v2286_v21, %s2862_s14 }
0x1327   :  { %v2289_v22 = vpop.permute.xlu0 %2288 }
0x1328   :  { %2291 = vst.msk [vmem:[#allocation2] sm:$0x3] %vm366_vm1, %v2289_v22 }
0x1329   :  { %2293 = vst.msk [vmem:[#allocation4 + $0xe] sm:$0x3] %vm366_vm1, %v2289_v22 }
0x132f   :  { %v2557_v23 = vld [vmem:[#allocation2] sm:$0x3] }
0x1330   :  { %v2301_v24 = vld [vmem:[#allocation4 + $0xe] sm:$0x3]  ;;  %2558 = vst.msk [vmem:[#allocation15] sm:$0x3] %vm366_vm1, %v2557_v23 }
0x1331   :  { %2332 = vst [vmem:[#allocation1 + $0x23] ss:$4 sm:$0xff] %v2301_v24  ;;  %2582 = dma.vmem_to_hbm [thread:$0]  %s2578_s18, 32, %s2580_s21, [#allocation16]  }
0x1338   :  { %v2334_v25 = vld.sshfl [vmem:[#allocation1 + $0x20] sm:$0xff pattern:$0x73625140] }
0x1339   :  { %v2337_v26 = vsel %vm119_vm0, %v2334_v25, 0 }
0x133a   :  { %v2367_v28 = vand.u32 4294901760, %v2337_v26 }
0x133c   :  { %2417 = vmatmul.f32.gmra.mxu1 %v2367_v28  ;;  %v2368_v29 = vsub.f32 %v2337_v26, %v2367_v28 }
0x133e   :  { %2452 = vmatmul.f32.gmra.mxu2 %v2368_v29  ;;  %v2369_v30 = vand.u32 4294901760, %v2368_v29 }
0x1340   :  { %2485 = vmatmul.f32.gmra.mxu3 %v2369_v30  ;;  %v2370_v31 = vsub.f32 %v2368_v29, %v2369_v30 }
0x1342   :  { %v2371_v32 = vand.u32 4294901760, %v2370_v31 }
0x1344   :  { %2372 = vmatmul.f32.gmra.mxu0 %v2371_v32  ;;  %2547 = vmatmul.f32.vlgmr.msra.gmra.mxu1 %v3362_v44 }
0x134c   :  { %2518 = vmatmul.f32.vlgmr.msra.gmra.mxu0 %v3362_v44  ;;  %2551 = vmatmul.f32.gmra.mxu1 %v2367_v28  ;;  %v2448_v44 = vpop.f32.mrf.mxu2 }
0x134d   :  { %v2449_v57 = vadd.f32 %v2448_v44, %v2415_v49 }
0x134f   :  { %v2481_v45 = vadd.f32 %v2480_v36, %v2449_v57 }
0x1354   :  { %2522 = vmatmul.f32.gmra.mxu0 %v2367_v28 }
0x13b9   :  { %v2418_v48 = vpop.f32.mrf.mxu1 }
0x13c1   :  { %v2373_v53 = vpop.f32.mrf.mxu0  ;;  %v2548_v55 = vpop.f32.mrf.mxu1 }
0x13c2   :  { %v2374_v60 = vadd.f32 %v2626_v33, %v2373_v53  ;;  %v2453_v39 = vpop.f32.mrf.mxu2 }
0x13c3   :  { %v2486_v63 = vpop.f32.mrf.mxu3 }
0x13c4   :  { %v2419_v52 = vadd.f32 %v2418_v48, %v2374_v60 }
0x13c6   :  { %v2454_v61 = vadd.f32 %v2453_v39, %v2419_v52 }
0x13c8   :  { %v2487_v41 = vadd.f32 %v2486_v63, %v2454_v61 }
0x13c9   :  { %v2519_v37 = vpop.f32.mrf.mxu0  ;;  %v2552_v46 = vpop.f32.mrf.mxu1 }
0x13ca   :  { %v2520_v38 = vadd.f32 %v2519_v37, %v2481_v45 }
0x13cc   :  { %v2549_v40 = vadd.f32 %v2548_v55, %v2520_v38 }
0x13ce   :  { %2555 = vst.msk [vmem:[#allocation14] sm:$0xff] %vm119_vm0, %v2549_v40 }
0x13d1   :  { %v2523_v42 = vpop.f32.mrf.mxu0 }
0x13d2   :  { %v2524_v2 = vadd.f32 %v2523_v42, %v2487_v41 }
0x13d4   :  { %v2553_v47 = vadd.f32 %v2552_v46, %v2524_v2 }
0x13d6   :  { %2556 = vst.msk [vmem:[#allocation14 + $0x8] sm:$0xff] %vm119_vm0, %v2553_v47 }
0x13d7   :  { %2571 = dma.vmem_to_hbm [thread:$0]  %s2564_s9, 256, %s2566_s26, [#allocation7], %s2856_s1, %s2856_s1, %s2857_s22  }
0x13d8   :  { %2850 = dma.done.wait [#allocation7], 256  }
0x13d9   :  { %2851 = vsyncadd [#allocation7], 4294967040 }
0x13da   :  { %2852 = dma.done.wait [#allocation16], 32  }
0x13db   :  { %2853 = vsyncadd [#allocation16], 4294967264 }
0x13dc   :  { %2591 = vsyncpa [#allocation6], 1 }
0x13dd   :  { %2592 = vsyncpa [#allocation9], 1 }
0x13de   :  { %2593 = vsyncpa [#allocation12], 1 }
0x13df   :  { %2594 = vsyncpa [#allocation7], 1 }
0x13e0   :  { %2595 = vsyncpa [#allocation16], 1 }

</bundles_post_ra>
